<compile_context>
chip_gen: v7x
topology: tpu7x:2x2x1
jax: 0.10.0
libtpu: 0.0.40
codegen_flags: <defaults>
</compile_context>

<pallas_src>
import functools

import jax
import jax.numpy as jnp
import numpy as np
from jax.experimental import pallas as pl
from jax.experimental.pallas import tpu as pltpu

LANE = 128  # feature axis of weights / accumulator / output padded to lane width


def _round_up(x, m):
    return ((x + m - 1) // m) * m


def gnn_kernel(gidx_ref, tidx_ref, table_ref, wa_ref, ba_ref, wh_ref,
               out_ref, acc_ref, *, d_pad):
    # gidx_ref:  [TILE_E, 3]       gather indices into the stacked table (node / rel / query)
    # tidx_ref:  [1, TILE_E]       tail indices (padded edges = -1 -> dropped)
    # table_ref: [K_pad, 2*D_pad]  stacked gather table (see header comment)
    # wa_ref:    [1, D_pad]        w_alpha weight row (zero padded)
    # ba_ref:    [1, 1]            w_alpha bias
    # wh_ref:    [D_pad, D_pad]    W_h (zero-padded rows/cols)
    # out_ref:   [T_pad, D_pad]    per-shard output block
    # acc_ref:   [T_pad, D_pad]    persistent (per-core) accumulator across the edge axis
    tile_e = gidx_ref.shape[0]
    t_pad = acc_ref.shape[0]
    k_pad = table_ref.shape[0]

    @pl.when(pl.program_id(1) == 0)
    def _():
        acc_ref[...] = jnp.zeros_like(acc_ref)

    gidx = gidx_ref[...]                                              # [TILE_E, 3] int32

    # Fused gather one-hot: each edge row has (up to) three ones hitting its node,
    # relation and query-relation rows.  The three index ranges are disjoint, so OR == sum.
    cols = jax.lax.broadcasted_iota(jnp.int32, (tile_e, k_pad), 1)    # [TILE_E, K_pad]
    hit = (cols == gidx[:, 0:1]) | (cols == gidx[:, 1:2]) | (cols == gidx[:, 2:3])
    onehot_g = hit.astype(jnp.float32)                                # [TILE_E, K_pad]

    # One MXU matmul performs the gather AND the fused attention pre-activation:
    #   g[:, :D_pad]        = h_e@Ws + hr@Wr + q_r@Wqr + bqr
    #   g[:, D_pad:2*D_pad] = h_e + hr
    g = jnp.dot(onehot_g, table_ref[...], preferred_element_type=jnp.float32)

    s = jnp.maximum(g[:, :d_pad], 0.0)                                # [TILE_E, D_pad]
    # alpha = sigmoid(s @ wa + ba) as VPU multiply + lane reduction (no N=1 matmul)
    alpha = jax.nn.sigmoid(
        jnp.sum(s * wa_ref[...], axis=-1, keepdims=True) + ba_ref[...])  # [TILE_E, 1]
    message = alpha * g[:, d_pad:]                                    # [TILE_E, D_pad]

    # scatter-sum over tail_index: pre-transposed one-hot (TILE_E lane dense)
    rows = jax.lax.broadcasted_iota(jnp.int32, (t_pad, tile_e), 0)    # [T_pad, TILE_E]
    onehot_t = (rows == tidx_ref[...]).astype(jnp.float32)            # [T_pad, TILE_E]
    acc_ref[...] += jnp.dot(onehot_t, message,
                            preferred_element_type=jnp.float32)       # [T_pad, D_pad]

    @pl.when(pl.program_id(1) == pl.num_programs(1) - 1)
    def _():
        # new_hidden = act(W_h(message_agg)), act = identity; lane-dense store
        out_ref[...] = jnp.dot(acc_ref[...], wh_ref[...],
                               preferred_element_type=jnp.float32)


def _default_core_shards():
    # v7x has 2 TensorCores/chip; shard the edge reduction across them.
    try:
        kind = jax.devices()[0].device_kind.lower()
        if "v7" in kind:
            return 2
    except Exception:
        pass
    return 1


def gnn_forward(query_rel, temp_neighbors_facts, tail_index, hidden,
                rel_table, params, num_tail, *, tile_e=8192, num_core_shards=None,
                vmem_limit_bytes=48 * 1024 * 1024):
    if num_core_shards is None:
        num_core_shards = _default_core_shards()

    b = temp_neighbors_facts[:, 0]
    n = temp_neighbors_facts[:, 1]
    r = temp_neighbors_facts[:, 3]

    E = int(temp_neighbors_facts.shape[0])
    N, D = hidden.shape
    R2 = int(rel_table.shape[0])          # 2*num_rel + 1
    B = int(query_rel.shape[0])

    assert D <= LANE, "kernel assumes emb_dim <= 128"
    D_pad = LANE
    T = int(num_tail)
    T_pad = max(8, _round_up(T, 8))

    K = N + R2 + B
    K_pad = _round_up(K, LANE)
    # TODO(synk): for very large node/relation tables (stacked table >> VMEM) fall back to
    # streaming pre-gathered activations instead of the in-kernel one-hot gather.
    assert K_pad * 2 * D_pad * 4 <= 8 * 1024 * 1024, "gather table too large for VMEM path"

    # ---- tiny XLA precomputes: fold Ws/Wr/Wqr + bqr + embedding gathers into one table ----
    hidden = hidden.astype(jnp.float32)
    rel_table = rel_table.astype(jnp.float32)
    qrel = rel_table[query_rel + 1]                                   # [B, D]

    def pad_cols(x):
        return jnp.pad(x.astype(jnp.float32), ((0, 0), (0, D_pad - D)))

    tab_n = jnp.concatenate([pad_cols(hidden @ params["Ws"]), pad_cols(hidden)], axis=1)
    tab_r = jnp.concatenate([pad_cols(rel_table @ params["Wr"]), pad_cols(rel_table)], axis=1)
    tab_b = jnp.concatenate([pad_cols(qrel @ params["Wqr"] + params["bqr"]),
                             jnp.zeros((B, D_pad), jnp.float32)], axis=1)
    table = jnp.concatenate([tab_n, tab_r, tab_b], axis=0)            # [K, 2*D_pad]
    table = jnp.pad(table, ((0, K_pad - K), (0, 0)))                  # [K_pad, 2*D_pad]

    wa_row = pad_cols(params["wa"].T)                                 # [1, D_pad]
    ba = params["ba"].astype(jnp.float32)                             # [1, 1]
    wh = jnp.pad(params["Wh"].astype(jnp.float32),
                 ((0, D_pad - D), (0, D_pad - D)))                    # [D_pad, D_pad]

    # ---- edge tiling: large tiles, clamped so small inputs run as one grid step ----
    assert tile_e % LANE == 0
    tile_e = min(tile_e, _round_up(max(E, 1), LANE))
    steps = (E + tile_e - 1) // tile_e
    steps = _round_up(steps, num_core_shards)
    steps_per_shard = steps // num_core_shards
    E_pad = steps * tile_e

    # per-edge index stream: 16 B/edge total (3 gather indices + 1 tail index)
    gidx = jnp.stack([n, N + (r + 1), N + R2 + b], axis=1).astype(jnp.int32)   # [E, 3]
    gidx = jnp.pad(gidx, ((0, E_pad - E), (0, 0)))                             # [E_pad, 3]
    # NOTE: tail indices outside [0, num_tail) (incl. the -1 padding) are dropped by the
    # one-hot scatter — same semantics as the reference wrapper below.
    tidx = jnp.pad(tail_index.astype(jnp.int32), (0, E_pad - E),
                   constant_values=-1)[None, :]                                # [1, E_pad]

    const = lambda s, i: (0, 0)
    edge_blk = lambda s, i: s * steps_per_shard + i

    kernel = functools.partial(gnn_kernel, d_pad=D_pad)
    out = pl.pallas_call(
        kernel,
        out_shape=jax.ShapeDtypeStruct((num_core_shards * T_pad, D_pad), jnp.float32),
        grid_spec=pltpu.PrefetchScalarGridSpec(
            num_scalar_prefetch=0,
            grid=(num_core_shards, steps_per_shard),
            in_specs=[
                pl.BlockSpec((tile_e, 3), lambda s, i: (edge_blk(s, i), 0)),   # gather idx
                pl.BlockSpec((1, tile_e), lambda s, i: (0, edge_blk(s, i))),   # tail idx
                pl.BlockSpec((K_pad, 2 * D_pad), const),                       # gather table
                pl.BlockSpec((1, D_pad), const),                               # wa row
                pl.BlockSpec((1, 1), const),                                   # ba
                pl.BlockSpec((D_pad, D_pad), const),                           # Wh
            ],
            out_specs=pl.BlockSpec((T_pad, D_pad), lambda s, i: (s, 0)),
            scratch_shapes=[pltpu.VMEM((T_pad, D_pad), jnp.float32)],
        ),
        compiler_params=pltpu.CompilerParams(
            dimension_semantics=("parallel", "arbitrary"),   # shards parallel, E reduction
            vmem_limit_bytes=vmem_limit_bytes),
    )(gidx, tidx, table, wa_row, ba, wh)

    out = out.reshape(num_core_shards, T_pad, D_pad).sum(axis=0)      # combine TC partials
    return out[:T, :D]


def gnn_reference(query_rel, facts, tail_index, hidden, rel_table, params, num_tail):
    b, n, r = facts[:, 0], facts[:, 1], facts[:, 3]
    h_e = hidden[n]
    hr = rel_table[r + 1]
    q_r = rel_table[query_rel + 1][b]
    s = jnp.maximum(h_e @ params["Ws"] + hr @ params["Wr"]
                    + q_r @ params["Wqr"] + params["bqr"], 0.0)
    alpha = jax.nn.sigmoid(s @ params["wa"] + params["ba"])
    message = alpha * (h_e + hr)
    agg = jnp.zeros((num_tail, h_e.shape[1]), jnp.float32).at[tail_index].add(message)
    return agg @ params["Wh"]


if __name__ == "__main__":
    emb_dim = 32
    num_rel = 5
    B, E, N, T = 4, 300, 10, 8   # queries, neighbor facts, hidden nodes, tail nodes

    key = jax.random.PRNGKey(0)
    ks = jax.random.split(key, 17)

    # embedding table / hidden states
    rel_table = jax.random.normal(ks[0], (2 * num_rel + 1, emb_dim), jnp.float32)
    hidden = jax.random.normal(ks[1], (N, emb_dim), jnp.float32)

    # deterministic synthetic parameters (Linear weights pre-transposed to [in, out])
    params = {
        "Ws":  0.1 * jax.random.normal(ks[2], (emb_dim, emb_dim), jnp.float32),
        "Wr":  0.1 * jax.random.normal(ks[3], (emb_dim, emb_dim), jnp.float32),
        "Wqr": 0.1 * jax.random.normal(ks[4], (emb_dim, emb_dim), jnp.float32),
        "bqr": 0.1 * jax.random.normal(ks[5], (1, emb_dim), jnp.float32),
        "wa":  0.1 * jax.random.normal(ks[6], (emb_dim, 1), jnp.float32),
        "ba":  0.1 * jax.random.normal(ks[7], (1, 1), jnp.float32),
        "Wh":  0.1 * jax.random.normal(ks[8], (emb_dim, emb_dim), jnp.float32),
    }

    # temp_neighbors_facts columns: [b, n, h, r, t, ts]
    b_col = jax.random.randint(ks[9],  (E,), 0, B, jnp.int32)
    n_col = jax.random.randint(ks[10], (E,), 0, N, jnp.int32)
    h_col = jax.random.randint(ks[11], (E,), 0, N, jnp.int32)
    r_col = jax.random.randint(ks[12], (E,), 0, 2 * num_rel, jnp.int32)
    t_col = jax.random.randint(ks[13], (E,), 0, N, jnp.int32)
    ts_col = jax.random.randint(ks[14], (E,), 0, 100, jnp.int32)
    facts = jnp.stack([b_col, n_col, h_col, r_col, t_col, ts_col], axis=1)

    query_rel = jax.random.randint(ks[15], (B,), 0, 2 * num_rel, jnp.int32)
    tail_index = jax.random.randint(ks[16], (E,), 0, T, jnp.int32)

    ref = gnn_reference(query_rel, facts, tail_index, hidden, rel_table, params, T)

    # 1) defaults: large tile clamped to E -> single grid step per shard
    out = gnn_forward(query_rel, facts, tail_index, hidden, rel_table, params, T)
    out = jax.block_until_ready(out)
    np.testing.assert_allclose(np.asarray(out), np.asarray(ref), rtol=1e-4, atol=1e-4)

    # 2) small tiles + explicit 2-way core sharding: exercises init/accumulate/finalize,
    #    edge padding and the per-shard partial-sum combine (serial loop on 1-TC chips).
    out2 = gnn_forward(query_rel, facts, tail_index, hidden, rel_table, params, T,
                       tile_e=128, num_core_shards=2)
    out2 = jax.block_until_ready(out2)
    np.testing.assert_allclose(np.asarray(out2), np.asarray(ref), rtol=1e-4, atol=1e-4)

    print("KERNEL_OK")
</pallas_src>

<mosaic_0001>
module attributes {stable_mosaic.version = 11 : i64} {
  func.func @gnn_kernel(%arg0: i32, %arg1: i32, %arg2: memref<384x3xi32, #tpu.memory_space<vmem>>, %arg3: memref<1x384xi32, #tpu.memory_space<vmem>>, %arg4: memref<128x256xf32, #tpu.memory_space<vmem>>, %arg5: memref<1x128xf32, #tpu.memory_space<vmem>>, %arg6: memref<1x1xf32, #tpu.memory_space<vmem>>, %arg7: memref<128x128xf32, #tpu.memory_space<vmem>>, %arg8: memref<8x128xf32, #tpu.memory_space<vmem>>, %arg9: memref<8x128xf32, #tpu.memory_space<vmem>>) attributes {dimension_semantics = [#tpu.dimension_semantics<parallel>, #tpu.dimension_semantics<arbitrary>], iteration_bounds = array<i64: 1, 1>, scalar_prefetch = 0 : i64, scratch_operands = 1 : i64, tpu.core_type = #tpu.core_type<tc>, window_params = [{transform_indices = @transform_0, window_bounds = array<i64: 384, 3>}, {transform_indices = @transform_1, window_bounds = array<i64: 1, 384>}, {pipeline_mode = #tpu.pipeline_mode<synchronous>, transform_indices = @transform_2, window_bounds = array<i64: 128, 256>}, {pipeline_mode = #tpu.pipeline_mode<synchronous>, transform_indices = @transform_3, window_bounds = array<i64: 1, 128>}, {pipeline_mode = #tpu.pipeline_mode<synchronous>, transform_indices = @transform_4, window_bounds = array<i64: 1, 1>}, {pipeline_mode = #tpu.pipeline_mode<synchronous>, transform_indices = @transform_5, window_bounds = array<i64: 128, 128>}, {transform_indices = @transform_6, window_bounds = array<i64: 8, 128>}]} {
    %c0_i32 = arith.constant 0 : i32
    %0 = arith.cmpi eq, %arg1, %c0_i32 : i32
    %1 = arith.extui %0 : i1 to i32
    %c0_i32_0 = arith.constant 0 : i32
    %2 = arith.cmpi ne, %1, %c0_i32_0 : i32
    scf.if %2 {
      %cst_20 = arith.constant 0.000000e+00 : f32
      %52 = vector.broadcast %cst_20 : f32 to vector<8x128xf32>
      %c0_21 = arith.constant 0 : index
      %c0_22 = arith.constant 0 : index
      %53 = vector.load %arg9[%c0_21, %c0_22] : memref<8x128xf32, #tpu.memory_space<vmem>>, vector<8x128xf32>
      tpu.vector_store %arg9[%c0_21, %c0_22], %52 {strides = array<i32>} : memref<8x128xf32, #tpu.memory_space<vmem>>, vector<8x128xf32>,
    } else {
    }
    %c0 = arith.constant 0 : index
    %c0_1 = arith.constant 0 : index
    %3 = vector.load %arg2[%c0, %c0_1] : memref<384x3xi32, #tpu.memory_space<vmem>>, vector<384x3xi32>
    %4 = tpu.iota {dimensions = array<i32: 1>} : vector<384x128xi32>
    %5 = vector.extract_strided_slice %3 {offsets = [0, 0], sizes = [384, 1], strides = [1, 1]} : vector<384x3xi32> to vector<384x1xi32>
    %6 = vector.broadcast %5 : vector<384x1xi32> to vector<384x128xi32>
    %7 = arith.cmpi eq, %4, %6 : vector<384x128xi32>
    %8 = vector.extract_strided_slice %3 {offsets = [0, 1], sizes = [384, 1], strides = [1, 1]} : vector<384x3xi32> to vector<384x1xi32>
    %9 = vector.broadcast %8 : vector<384x1xi32> to vector<384x128xi32>
    %10 = arith.cmpi eq, %4, %9 : vector<384x128xi32>
    %11 = arith.ori %7, %10 : vector<384x128xi1>
    %12 = vector.extract_strided_slice %3 {offsets = [0, 2], sizes = [384, 1], strides = [1, 1]} : vector<384x3xi32> to vector<384x1xi32>
    %13 = vector.broadcast %12 : vector<384x1xi32> to vector<384x128xi32>
    %14 = arith.cmpi eq, %4, %13 : vector<384x128xi32>
    %15 = arith.ori %11, %14 : vector<384x128xi1>
    %16 = arith.extui %15 : vector<384x128xi1> to vector<384x128xi32>
    %17 = arith.sitofp %16 : vector<384x128xi32> to vector<384x128xf32>
    %c0_2 = arith.constant 0 : index
    %c0_3 = arith.constant 0 : index
    %18 = vector.load %arg4[%c0_2, %c0_3] : memref<128x256xf32, #tpu.memory_space<vmem>>, vector<128x256xf32>
    %cst = arith.constant dense<0.000000e+00> : vector<384x256xf32>
    %19 = tpu.matmul %17, %18, %cst {dimension_numbers = #tpu.dot_dimension_numbers<[1], [0], [0], [1], [0, 0, 1, 1], [], []>} : vector<384x128xf32>, vector<128x256xf32>, vector<384x256xf32> -> vector<384x256xf32>
    %20 = vector.extract_strided_slice %19 {offsets = [0, 0], sizes = [384, 128], strides = [1, 1]} : vector<384x256xf32> to vector<384x128xf32>
    %cst_4 = arith.constant 0.000000e+00 : f32
    %21 = vector.broadcast %cst_4 : f32 to vector<384x128xf32>
    %22 = arith.maximumf %20, %21 : vector<384x128xf32>
    %c0_5 = arith.constant 0 : index
    %c0_6 = arith.constant 0 : index
    %23 = vector.load %arg5[%c0_5, %c0_6] : memref<1x128xf32, #tpu.memory_space<vmem>>, vector<1x128xf32>
    %24 = vector.broadcast %23 : vector<1x128xf32> to vector<384x128xf32>
    %25 = arith.mulf %22, %24 : vector<384x128xf32>
    %cst_7 = arith.constant dense<0.000000e+00> : vector<384xf32>
    %26 = vector.multi_reduction <add>, %25, %cst_7 [1] : vector<384x128xf32> to vector<384xf32>
    %27 = vector.shape_cast %26 : vector<384xf32> to vector<384x1xf32>
    %c0_8 = arith.constant 0 : index
    %c0_9 = arith.constant 0 : index
    %28 = vector.load %arg6[%c0_8, %c0_9] : memref<1x1xf32, #tpu.memory_space<vmem>>, vector<1x1xf32>
    %29 = vector.broadcast %28 : vector<1x1xf32> to vector<384x1xf32>
    %30 = arith.addf %27, %29 : vector<384x1xf32>
    %31 = arith.negf %30 : vector<384x1xf32>
    %32 = math.exp %31 : vector<384x1xf32>
    %cst_10 = arith.constant 1.000000e+00 : f32
    %33 = vector.broadcast %cst_10 : f32 to vector<384x1xf32>
    %34 = arith.addf %33, %32 : vector<384x1xf32>
    %35 = arith.divf %33, %34 : vector<384x1xf32>
    %36 = vector.extract_strided_slice %19 {offsets = [0, 128], sizes = [384, 128], strides = [1, 1]} : vector<384x256xf32> to vector<384x128xf32>
    %37 = vector.broadcast %35 : vector<384x1xf32> to vector<384x128xf32>
    %38 = arith.mulf %37, %36 : vector<384x128xf32>
    %39 = tpu.iota {dimensions = array<i32: 0>} : vector<8x384xi32>
    %c0_11 = arith.constant 0 : index
    %c0_12 = arith.constant 0 : index
    %40 = vector.load %arg3[%c0_11, %c0_12] : memref<1x384xi32, #tpu.memory_space<vmem>>, vector<1x384xi32>
    %41 = vector.broadcast %40 : vector<1x384xi32> to vector<8x384xi32>
    %42 = arith.cmpi eq, %39, %41 : vector<8x384xi32>
    %43 = arith.extui %42 : vector<8x384xi1> to vector<8x384xi32>
    %44 = arith.sitofp %43 : vector<8x384xi32> to vector<8x384xf32>
    %c0_13 = arith.constant 0 : index
    %c0_14 = arith.constant 0 : index
    %45 = vector.load %arg9[%c0_13, %c0_14] : memref<8x128xf32, #tpu.memory_space<vmem>>, vector<8x128xf32>
    %cst_15 = arith.constant dense<0.000000e+00> : vector<8x128xf32>
    %46 = tpu.matmul %44, %38, %cst_15 {dimension_numbers = #tpu.dot_dimension_numbers<[1], [0], [0], [1], [0, 0, 1, 1], [], []>} : vector<8x384xf32>, vector<384x128xf32>, vector<8x128xf32> -> vector<8x128xf32>
    %47 = arith.addf %45, %46 : vector<8x128xf32>
    %c0_16 = arith.constant 0 : index
    %c0_17 = arith.constant 0 : index
    %48 = vector.load %arg9[%c0_16, %c0_17] : memref<8x128xf32, #tpu.memory_space<vmem>>, vector<8x128xf32>
    tpu.vector_store %arg9[%c0_16, %c0_17], %47 {strides = array<i32>} : memref<8x128xf32, #tpu.memory_space<vmem>>, vector<8x128xf32>,
    %c0_i32_18 = arith.constant 0 : i32
    %49 = arith.cmpi eq, %arg1, %c0_i32_18 : i32
    %50 = arith.extui %49 : i1 to i32
    %c0_i32_19 = arith.constant 0 : i32
    %51 = arith.cmpi ne, %50, %c0_i32_19 : i32
    scf.if %51 {
      %c0_20 = arith.constant 0 : index
      %c0_21 = arith.constant 0 : index
      %52 = vector.load %arg9[%c0_20, %c0_21] : memref<8x128xf32, #tpu.memory_space<vmem>>, vector<8x128xf32>
      %c0_22 = arith.constant 0 : index
      %c0_23 = arith.constant 0 : index
      %53 = vector.load %arg7[%c0_22, %c0_23] : memref<128x128xf32, #tpu.memory_space<vmem>>, vector<128x128xf32>
      %cst_24 = arith.constant dense<0.000000e+00> : vector<8x128xf32>
      %54 = tpu.matmul %52, %53, %cst_24 {dimension_numbers = #tpu.dot_dimension_numbers<[1], [0], [0], [1], [0, 0, 1, 1], [], []>} : vector<8x128xf32>, vector<128x128xf32>, vector<8x128xf32> -> vector<8x128xf32>
      %c0_25 = arith.constant 0 : index
      %c0_26 = arith.constant 0 : index
      %55 = vector.load %arg8[%c0_25, %c0_26] : memref<8x128xf32, #tpu.memory_space<vmem>>, vector<8x128xf32>
      tpu.vector_store %arg8[%c0_25, %c0_26], %54 {strides = array<i32>} : memref<8x128xf32, #tpu.memory_space<vmem>>, vector<8x128xf32>,
    } else {
    }
    return
  }
  func.func @transform_0(%arg0: i32, %arg1: i32) -> (i32, i32) {
    %c1_i32 = arith.constant 1 : i32
    %0 = arith.muli %arg0, %c1_i32 : i32
    %1 = arith.addi %0, %arg1 : i32
    %c0_i32 = arith.constant 0 : i32
    %c0_i32_0 = arith.constant 0 : i32
    return %1, %c0_i32 : i32, i32
  }
  func.func @transform_1(%arg0: i32, %arg1: i32) -> (i32, i32) {
    %c1_i32 = arith.constant 1 : i32
    %0 = arith.muli %arg0, %c1_i32 : i32
    %1 = arith.addi %0, %arg1 : i32
    %c0_i32 = arith.constant 0 : i32
    %c0_i32_0 = arith.constant 0 : i32
    return %c0_i32, %1 : i32, i32
  }
  func.func @transform_2(%arg0: i32, %arg1: i32) -> (i32, i32) {
    %c0_i32 = arith.constant 0 : i32
    %c0_i32_0 = arith.constant 0 : i32
    %c0_i32_1 = arith.constant 0 : i32
    return %c0_i32, %c0_i32_0 : i32, i32
  }
  func.func @transform_3(%arg0: i32, %arg1: i32) -> (i32, i32) {
    %c0_i32 = arith.constant 0 : i32
    %c0_i32_0 = arith.constant 0 : i32
    %c0_i32_1 = arith.constant 0 : i32
    return %c0_i32, %c0_i32_0 : i32, i32
  }
  func.func @transform_4(%arg0: i32, %arg1: i32) -> (i32, i32) {
    %c0_i32 = arith.constant 0 : i32
    %c0_i32_0 = arith.constant 0 : i32
    %c0_i32_1 = arith.constant 0 : i32
    return %c0_i32, %c0_i32_0 : i32, i32
  }
  func.func @transform_5(%arg0: i32, %arg1: i32) -> (i32, i32) {
    %c0_i32 = arith.constant 0 : i32
    %c0_i32_0 = arith.constant 0 : i32
    %c0_i32_1 = arith.constant 0 : i32
    return %c0_i32, %c0_i32_0 : i32, i32
  }
  func.func @transform_6(%arg0: i32, %arg1: i32) -> (i32, i32) {
    %c0_i32 = arith.constant 0 : i32
    %c0_i32_0 = arith.constant 0 : i32
    return %arg0, %c0_i32 : i32, i32
  }
}

</mosaic_0001>

<bundles_post_ra>
// kernel: tpu_custom_call.1
= control target key start
LH: loop header
LB: loop body
LE: loop exit
PB: predicated region body
PF: predicated region fallthrough
CT: control target
= control target key end

     0   :  { %s4547_s0 = inlined_call_operand.vmem [shape: s32[384,3], index: 0, kind: input, shape index: {}]   ;;  %s4548_s1 = inlined_call_operand.vmem [shape: s32[1,384], index: 1, kind: input, shape index: {}]   ;;  %s4549_s2 = inlined_call_operand.vmem [shape: f32[128,256], index: 2, kind: input, shape index: {}]   ;;  %s4550_s3 = inlined_call_operand.vmem [shape: f32[1,128], index: 3, kind: input, shape index: {}]   ;;  %s4551_s4 = inlined_call_operand.<no memory space> [shape: f32[1,1], index: 4, kind: input, shape index: {}]   ;;  %s4552_s5 = inlined_call_operand.vmem [shape: f32[128,128], index: 5, kind: input, shape index: {}]   ;;  %s4553_s6 = inlined_call_operand.hbm [shape: f32[8,128], index: 6, kind: output, shape index: {}]  }
   0x1   :  { %v11_v0 = vstv %s4551_s4 }
   0x2   :  { %12 = vst [vmem:[#allocation3] sm:$0x1] %v11_v0 }
   0x3   :  { %v3169_v1 = vld [vmem:[%s4547_s0] sm:$0xff]  ;;  %v3120_v2 = vmov 2   ;;  %v3121_v3 = vmov 0   ;;  %v3178_v4 = vld [vmem:[%s4547_s0 + $0x28] sm:$0xff]  ;;  %v3188_v6 = vld [vmem:[%s4547_s0 + $0x30] sm:$0xff] }
   0x4   :  { %2814 = vset.pattern.permute.xlu1 %v3120_v2  ;;  %2813 = vset.pattern.permute.xlu0 %v3121_v3  ;;  %v73_v5 = vld [vmem:[%s4547_s0 + $0x8] sm:$0xff] }
   0x5   :  { %555 = vperm.xlu1 %2814, %v3169_v1   ;;  %123 = vperm.xlu0 %2813, %v3169_v1  }
   0x9   :  { %2815 = vset.pattern.permute.xlu1 %v3121_v3  ;;  %138 = vperm.xlu0 %2813, %v3178_v4  }
   0xa   :  { %126 = vperm.xlu1 %2815, %v73_v5  }
   0xb   :  { %13 = vsyncpa [#allocation5], 0  ;;  %v3122_v7 = vmov 1   ;;  %v3195_v8 = vld [vmem:[%s4547_s0 + $0x50] sm:$0xff]  ;;  %v3204_v10 = vld [vmem:[%s4547_s0 + $0x58] sm:$0xff]  ;;  %s3127_s9 = smov [#allocation4]  }
   0xc   :  { %v74_v9 = vld [vmem:[%s4547_s0 + $0x10] sm:$0xff]  ;;  %v3211_v11 = vld [vmem:[%s4547_s0 + $0x78] sm:$0xff]  ;;  %v3218_v12 = vld [vmem:[%s4547_s0 + $0x80] sm:$0xff]  ;;  %s2369_s10 = sshll.u32 %s3127_s9, 4  ;;  %s2370_s10 = int_to_ptr.vmem [resolvable:$true] %s2369_s10 }
   0xd   :  { %141 = vperm.xlu0 %2813, %v3188_v6   ;;  %v3223_v13 = vld [vmem:[%s4547_s0 + $0x18] sm:$0xff]  ;;  %v3234_v14 = vld [vmem:[%s4547_s0 + $0x20] sm:$0xff]  ;;  %v891_v16 = vld [vmem:[%s4549_s2 + $0x8] sm:$0xff]  ;;  %s3096_s11 = scalar_lea.vmem %s2370_s10, 128  ;;  %p3101_p1 = scmp.lt.s32.totalorder %s2370_s10, %s2370_s10 }
   0xe   :  { %2816 = vset.pattern.permute.xlu1 %v3122_v7  ;;  %v3242_v15 = vld [vmem:[%s4547_s0 + $0x38] sm:$0xff]  ;;  %v890_v19 = vld [vmem:[%s4549_s2] sm:$0xff]  ;;  %v892_v20 = vld [vmem:[%s4549_s2 + $0x10] sm:$0xff]  ;;  %p3097_p0 = scmp.ne.s32.totalorder %s2370_s10, %s3096_s11  ;;  %p3102_p2 = scmp.lt.s32.totalorder %s3096_s11, %s3096_s11 }
   0xf   :  { %318 = vperm.xlu1 %2816, %v73_v5   ;;  %v893_v17 = vld [vmem:[%s4549_s2 + $0x18] sm:$0xff]  ;;  %v2679_v21 = vpack.c.bf16 %v892_v20, %v890_v19  ;;  %v895_v22 = vld [vmem:[%s4549_s2 + $0x28] sm:$0xff]  ;;  %v894_v25 = vld [vmem:[%s4549_s2 + $0x20] sm:$0xff] }
  0x10   :  { %v2677_v18 = vpack.c.bf16 %v893_v17, %v891_v16  ;;  %v897_v23 = vld [vmem:[%s4549_s2 + $0x38] sm:$0xff]  ;;  %v896_v26 = vld [vmem:[%s4549_s2 + $0x30] sm:$0xff]  ;;  %v3277_v28 = vld [vmem:[%s4547_s0 + $0x60] sm:$0xff]  ;;  %p3103_p3 = por %p3102_p2, %p3101_p1 }
  0x11   :  { %153 = vperm.xlu0 %2813, %v3195_v8   ;;  %v2681_v24 = vpack.c.bf16 %v897_v23, %v895_v22  ;;  %v2683_v27 = vpack.c.bf16 %v896_v26, %v894_v25  ;;  %v899_v29 = vld [vmem:[%s4549_s2 + $0x48] sm:$0xff]  ;;  %v901_v30 = vld [vmem:[%s4549_s2 + $0x58] sm:$0xff]  ;;  %v898_v32 = vld [vmem:[%s4549_s2 + $0x40] sm:$0xff] }
  0x12   :  { %2678 = vmatprep.subr.bf16.mxu0 %v2677_v18  ;;  %2789 = vmatprep.subr.bf16.mxu1 %v2677_v18  ;;  %v2685_v31 = vpack.c.bf16 %v901_v30, %v899_v29  ;;  %v900_v33 = vld [vmem:[%s4549_s2 + $0x50] sm:$0xff]  ;;  %v903_v35 = vld [vmem:[%s4549_s2 + $0x68] sm:$0xff]  ;;  %v905_v36 = vld [vmem:[%s4549_s2 + $0x78] sm:$0xff]  ;;  %p3104_p4 = pnand %p3103_p3, %p3097_p0 }
  0x13   :  { %2817 = vset.pattern.permute.xlu1 %v3121_v3  ;;  %2680 = vmatpush1.bf16.msra.mxu0 %v2679_v21  ;;  %v2687_v34 = vpack.c.bf16 %v900_v33, %v898_v32  ;;  %v2689_v37 = vpack.c.bf16 %v905_v36, %v903_v35  ;;  %v902_v38 = vld [vmem:[%s4549_s2 + $0x60] sm:$0xff]  ;;  %v904_v39 = vld [vmem:[%s4549_s2 + $0x70] sm:$0xff]  ;;  %v3311_v41 = vld [vmem:[%s4547_s0 + $0x88] sm:$0xff] }
  0x14   :  { %129 = vperm.xlu1 %2817, %v74_v9   ;;  %2797 = vmatpush1.bf16.msra.mxu1 %v2679_v21  ;;  %v2691_v40 = vpack.c.bf16 %v904_v39, %v902_v38  ;;  %v907_v42 = vld [vmem:[%s4549_s2 + $0x88] sm:$0xff]  ;;  %v909_v43 = vld [vmem:[%s4549_s2 + $0x98] sm:$0xff]  ;;  %v906_v45 = vld [vmem:[%s4549_s2 + $0x80] sm:$0xff] }
  0x15   :  { %156 = vperm.xlu0 %2813, %v3204_v10   ;;  %2682 = vmatprep.subr.bf16.mxu0 %v2681_v24  ;;  %v2693_v44 = vpack.c.bf16 %v909_v43, %v907_v42  ;;  %v908_v46 = vld [vmem:[%s4549_s2 + $0x90] sm:$0xff]  ;;  %v3330_v48 = vld [vmem:[%s4547_s0 + $0xa8] sm:$0xff]  ;;  %v913_v50 = vld [vmem:[%s4549_s2 + $0xb8] sm:$0xff] }
  0x16   :  { %2790 = vmatprep.subr.bf16.mxu1 %v2681_v24  ;;  %v2695_v47 = vpack.c.bf16 %v908_v46, %v906_v45  ;;  %v911_v49 = vld [vmem:[%s4549_s2 + $0xa8] sm:$0xff]  ;;  %v910_v52 = vld [vmem:[%s4549_s2 + $0xa0] sm:$0xff]  ;;  %v912_v53 = vld [vmem:[%s4549_s2 + $0xb0] sm:$0xff] }
  0x17   :  { %2684 = vmatpush1.bf16.msra.mxu0 %v2683_v27  ;;  %v2697_v51 = vpack.c.bf16 %v913_v50, %v911_v49  ;;  %v2699_v54 = vpack.c.bf16 %v912_v53, %v910_v52  ;;  %v3350_v55 = vld [vmem:[%s4547_s0 + $0xb0] sm:$0xff]  ;;  %v915_v56 = vld [vmem:[%s4549_s2 + $0xc8] sm:$0xff]  ;;  %v917_v57 = vld [vmem:[%s4549_s2 + $0xd8] sm:$0xff] }
  0x18   :  { %2818 = vset.pattern.permute.xlu1 %v3122_v7  ;;  %2798 = vmatpush1.bf16.msra.mxu1 %v2683_v27  ;;  %v2701_v58 = vpack.c.bf16 %v917_v57, %v915_v56  ;;  %v914_v59 = vld [vmem:[%s4549_s2 + $0xc0] sm:$0xff]  ;;  %v916_v60 = vld [vmem:[%s4549_s2 + $0xd0] sm:$0xff]  ;;  %v919_v62 = vld [vmem:[%s4549_s2 + $0xe8] sm:$0xff] }
  0x19   :  { %321 = vperm.xlu1 %2818, %v74_v9   ;;  %168 = vperm.xlu0 %2813, %v3211_v11   ;;  %v2703_v61 = vpack.c.bf16 %v916_v60, %v914_v59  ;;  %v921_v63 = vld [vmem:[%s4549_s2 + $0xf8] sm:$0xff]  ;;  %v80_v0 = vld [vmem:[%s4547_s0 + $0x40] sm:$0xff]  ;;  %v81_v16 = vld [vmem:[%s4547_s0 + $0x48] sm:$0xff] }
  0x1a   :  { %2686 = vmatprep.subr.bf16.mxu0 %v2685_v31  ;;  %2791 = vmatprep.subr.bf16.mxu1 %v2685_v31  ;;  %v3415_v17 = vld [vmem:[%s4547_s0 + $0x98] sm:$0xff]  ;;  %v3430_v18 = vld [vmem:[%s4547_s0 + $0xc0] sm:$0xff]  ;;  %v3445_v19 = vld [vmem:[%s4547_s0 + $0x110] sm:$0xff] }
  0x1b   :  { %2688 = vmatpush1.bf16.msra.mxu0 %v2687_v34  ;;  %v3452_v20 = vld [vmem:[%s4547_s0 + $0x118] sm:$0xff]  ;;  %v3458_v21 = vld [vmem:[%s4547_s0 + $0x120] sm:$0xff]  ;;  %v3469_v24 = vld [vmem:[%s4547_s0 + $0x128] sm:$0xff] }
  0x1c   :  { %2799 = vmatpush1.bf16.msra.mxu1 %v2687_v34  ;;  %2690 = vmatprep.subr.bf16.mxu0 %v2689_v37  ;;  %v3478_v26 = vld [vmem:[%s4547_s0 + $0x130] sm:$0xff]  ;;  %v3490_v29 = vld [vmem:[%s4547_s0 + $0x138] sm:$0xff]  ;;  %v3501_v32 = vld [vmem:[%s4547_s0 + $0x140] sm:$0xff] }
  0x1d   :  { %2819 = vset.pattern.permute.xlu1 %v3121_v3  ;;  %171 = vperm.xlu0 %2813, %v3218_v12   ;;  %v92_v35 = vld [vmem:[%s4547_s0 + $0xa0] sm:$0xff]  ;;  %v3579_v52 = vld [vmem:[%s4547_s0 + $0xe8] sm:$0xff] }
  0x1e   :  { %132 = vperm.xlu1 %2819, %v3223_v13   ;;  %2792 = vmatprep.subr.bf16.mxu1 %v2689_v37  ;;  %v3562_v46 = vld [vmem:[%s4547_s0 + $0xe0] sm:$0xff] }
  0x1f   :  { %2692 = vmatpush1.bf16.msra.mxu0 %v2691_v40 }
  0x20   :  { %2800 = vmatpush1.bf16.msra.mxu1 %v2691_v40  ;;  %2694 = vmatprep.subr.bf16.mxu0 %v2693_v44  ;;  %v3539_v40 = vld [vmem:[%s4547_s0 + $0xd0] sm:$0xff] }
  0x21   :  { %2843 = vset.pattern.permute.xlu0 %v3120_v2  ;;  %2793 = vmatprep.subr.bf16.mxu1 %v2693_v44 }
  0x22   :  { %2820 = vset.pattern.permute.xlu1 %v3120_v2  ;;  %558 = vperm.xlu0 %2843, %v73_v5   ;;  %v918_v5 = vld [vmem:[%s4549_s2 + $0xe0] sm:$0xff] }
  0x23   :  { %564 = vperm.xlu1 %2820, %v3223_v13   ;;  %2696 = vmatpush1.bf16.msra.mxu0 %v2695_v47 }
  0x24   :  { %2801 = vmatpush1.bf16.msra.mxu1 %v2695_v47  ;;  %2698 = vmatprep.subr.bf16.mxu0 %v2697_v51 }
  0x25   :  { %2794 = vmatprep.subr.bf16.mxu1 %v2697_v51 }
  0x26   :  { %561 = vperm.xlu0 %2843, %v74_v9  }
  0x27   :  { %2821 = vset.pattern.permute.xlu1 %v3121_v3  ;;  %2700 = vmatpush1.bf16.msra.mxu0 %v2699_v54 }
  0x28   :  { %135 = vperm.xlu1 %2821, %v3234_v14   ;;  %2802 = vmatpush1.bf16.msra.mxu1 %v2699_v54 }
  0x29   :  { %2702 = vmatprep.subr.bf16.mxu0 %v2701_v58  ;;  %2795 = vmatprep.subr.bf16.mxu1 %v2701_v58 }
  0x2a   :  { %573 = vperm.xlu0 %2843, %v3188_v6  }
  0x2b   :  { %2704 = vmatpush1.bf16.msra.mxu0 %v2703_v61 }
  0x2c   :  { %2822 = vset.pattern.permute.xlu1 %v3120_v2  ;;  %2803 = vmatpush1.bf16.msra.mxu1 %v2703_v61  ;;  %v4558_v61 = vlaneseq }
  0x2d   :  { %567 = vperm.xlu1 %2822, %v3234_v14  }
  0x2e   :  { %576 = vperm.xlu0 %2843, %v3242_v15  }
  0x31   :  { %2823 = vset.pattern.permute.xlu1 %v3122_v7 }
  0x32   :  { %330 = vperm.xlu1 %2823, %v3178_v4   ;;  %588 = vperm.xlu0 %2843, %v3204_v10  }
  0x36   :  { %2824 = vset.pattern.permute.xlu1 %v3120_v2  ;;  %591 = vperm.xlu0 %2843, %v3277_v28  }
  0x37   :  { %570 = vperm.xlu1 %2824, %v3178_v4   ;;  %v2705_v4 = vpack.c.bf16 %v921_v63, %v919_v62  ;;  %v3605_v62 = vld [vmem:[%s4547_s0 + $0xf0] sm:$0xff] }
  0x39   :  { %2706 = vmatprep.subr.bf16.mxu0 %v2705_v4  ;;  %2796 = vmatprep.subr.bf16.mxu1 %v2705_v4  ;;  %v3613_v4 = vand.u32 127, %v4558_v61 }
  0x3a   :  { %603 = vperm.xlu0 %2843, %v3218_v12  }
  0x3b   :  { %2825 = vset.pattern.permute.xlu1 %v3122_v7 }
  0x3c   :  { %333 = vperm.xlu1 %2825, %v3188_v6   ;;  %v920_v6 = vld [vmem:[%s4549_s2 + $0xf0] sm:$0xff] }
  0x3d   :  { %v2707_v9 = vpack.c.bf16 %v920_v6, %v918_v5  ;;  %v4556_v6 = vmov 1.0  }
  0x3e   :  { %606 = vperm.xlu0 %2843, %v3311_v41  }
  0x3f   :  { %2708 = vmatpush1.bf16.msra.mxu0 %v2707_v9  ;;  %2804 = vmatpush1.bf16.msra.mxu1 %v2707_v9 }
  0x40   :  { %2826 = vset.pattern.permute.xlu1 %v3121_v3 }
  0x41   :  { %144 = vperm.xlu1 %2826, %v3242_v15  }
  0x42   :  { %618 = vperm.xlu0 %2843, %v3330_v48  }
  0x45   :  { %2827 = vset.pattern.permute.xlu1 %v3122_v7 }
  0x46   :  { %336 = vperm.xlu1 %2827, %v3242_v15   ;;  %621 = vperm.xlu0 %2843, %v3350_v55   ;;  %v4554_v15 = vmov 0.0  }
  0x47   :  { %986 = vmatprep.mubr.f32.mxu0 %v4554_v15  ;;  %1184 = vmatprep.mubr.f32.mxu1 %v4554_v15 }
  0x4a   :  { %2828 = vset.pattern.permute.xlu1 %v3121_v3  ;;  %2856 = vset.pattern.permute.xlu0 %v3122_v7 }
  0x4b   :  { %147 = vperm.xlu1 %2828, %v80_v0   ;;  %315 = vperm.xlu0 %2856, %v3169_v1   ;;  %v85_v1 = vld [vmem:[%s4547_s0 + $0x68] sm:$0xff] }
  0x4f   :  { %2829 = vset.pattern.permute.xlu1 %v3120_v2  ;;  %324 = vperm.xlu0 %2856, %v3223_v13   ;;  %v86_v13 = vld [vmem:[%s4547_s0 + $0x70] sm:$0xff] }
  0x50   :  { %579 = vperm.xlu1 %2829, %v80_v0  }
  0x53   :  { %327 = vperm.xlu0 %2856, %v3234_v14   ;;  %v3408_v14 = vld [vmem:[%s4547_s0 + $0x90] sm:$0xff] }
  0x54   :  { %2830 = vset.pattern.permute.xlu1 %v3121_v3 }
  0x55   :  { %150 = vperm.xlu1 %2830, %v81_v16  }
  0x57   :  { %339 = vperm.xlu0 %2856, %v80_v0  }
  0x59   :  { %2831 = vset.pattern.permute.xlu1 %v3120_v2 }
  0x5a   :  { %582 = vperm.xlu1 %2831, %v81_v16  }
  0x5b   :  { %342 = vperm.xlu0 %2856, %v81_v16  }
  0x5e   :  { %2832 = vset.pattern.permute.xlu1 %v3122_v7 }
  0x5f   :  { %345 = vperm.xlu1 %2832, %v3195_v8   ;;  %354 = vperm.xlu0 %2856, %v85_v1  }
  0x63   :  { %2833 = vset.pattern.permute.xlu1 %v3120_v2  ;;  %357 = vperm.xlu0 %2856, %v86_v13  }
  0x64   :  { %585 = vperm.xlu1 %2833, %v3195_v8   ;;  %v3422_v8 = vld [vmem:[%s4547_s0 + $0xb8] sm:$0xff] }
  0x67   :  { %369 = vperm.xlu0 %2856, %v3408_v14  }
  0x68   :  { %2834 = vset.pattern.permute.xlu1 %v3122_v7 }
  0x69   :  { %348 = vperm.xlu1 %2834, %v3204_v10   ;;  %v3438_v10 = vld [vmem:[%s4547_s0 + $0x108] sm:$0xff] }
  0x6b   :  { %372 = vperm.xlu0 %2856, %v3415_v17  }
  0x6d   :  { %2835 = vset.pattern.permute.xlu1 %v3121_v3 }
  0x6e   :  { %159 = vperm.xlu1 %2835, %v3277_v28  }
  0x6f   :  { %384 = vperm.xlu0 %2856, %v3422_v8  }
  0x72   :  { %2836 = vset.pattern.permute.xlu1 %v3122_v7 }
  0x73   :  { %351 = vperm.xlu1 %2836, %v3277_v28   ;;  %387 = vperm.xlu0 %2856, %v3430_v18  }
  0x77   :  { %2837 = vset.pattern.permute.xlu1 %v3121_v3  ;;  %414 = vperm.xlu0 %2856, %v3438_v10  }
  0x78   :  { %162 = vperm.xlu1 %2837, %v85_v1  }
  0x7b   :  { %417 = vperm.xlu0 %2856, %v3445_v19  }
  0x7c   :  { %2838 = vset.pattern.permute.xlu1 %v3120_v2 }
  0x7d   :  { %594 = vperm.xlu1 %2838, %v85_v1  }
  0x7f   :  { %420 = vperm.xlu0 %2856, %v3452_v20  }
  0x81   :  { %2839 = vset.pattern.permute.xlu1 %v3121_v3 }
  0x82   :  { %165 = vperm.xlu1 %2839, %v86_v13  }
  0x83   :  { %423 = vperm.xlu0 %2856, %v3458_v21  }
  0x84   :  { %v3462_v22 = vpop.permute.xlu1 %555  ;;  %v3464_v23 = vpop.permute.xlu0 %123 }
  0x85   :  { %vm266_vm0 = vcmp.eq.s32.totalorder %v3613_v4, %v3464_v23  ;;  %vm698_vm2 = vcmp.eq.s32.totalorder %v3613_v4, %v3462_v22  ;;  %v3693_v22 = vld [vmem:[%s4547_s0 + $0x150] sm:$0xff] }
  0x86   :  { %2840 = vset.pattern.permute.xlu1 %v3120_v2 }
  0x87   :  { %597 = vperm.xlu1 %2840, %v86_v13   ;;  %426 = vperm.xlu0 %2856, %v3469_v24  }
  0x88   :  { %v3473_v25 = vpop.permute.xlu0 %138 }
  0x89   :  { %v3480_v27 = vpop.permute.xlu1 %126 }
  0x8a   :  { %vm267_vm7 = vcmp.eq.s32.totalorder %v3613_v4, %v3480_v27 }
  0x8b   :  { %2841 = vset.pattern.permute.xlu1 %v3122_v7  ;;  %429 = vperm.xlu0 %2856, %v3478_v26  }
  0x8c   :  { %360 = vperm.xlu1 %2841, %v3211_v11   ;;  %v3485_v28 = vpop.permute.xlu0 %141 }
  0x8e   :  { %v3492_v30 = vpop.permute.xlu1 %318 }
  0x8f   :  { %432 = vperm.xlu0 %2856, %v3490_v29   ;;  %vm459_vm4 = vcmp.eq.s32.totalorder %v3613_v4, %v3492_v30 }
  0x90   :  { %2842 = vset.pattern.permute.xlu1 %v3120_v2  ;;  %v3496_v31 = vpop.permute.xlu0 %153  ;;  %vm507_vm8 = vmor %vm267_vm7, %vm459_vm4 }
  0x91   :  { %600 = vperm.xlu1 %2842, %v3211_v11  }
  0x93   :  { %v3504_v33 = vpop.permute.xlu1 %129  ;;  %435 = vperm.xlu0 %2856, %v3501_v32  }
  0x94   :  { %v3507_v34 = vpop.permute.xlu0 %156  ;;  %vm268_vm12 = vcmp.eq.s32.totalorder %v3613_v4, %v3504_v33 }
  0x95   :  { %2844 = vset.pattern.permute.xlu1 %v3122_v7 }
  0x96   :  { %363 = vperm.xlu1 %2844, %v3218_v12   ;;  %v3529_v12 = vld [vmem:[%s4547_s0 + $0xc8] sm:$0xff] }
  0x97   :  { %2884 = vset.pattern.permute.xlu0 %v3121_v3 }
  0x98   :  { %v3515_v36 = vpop.permute.xlu1 %321  ;;  %v3517_v37 = vpop.permute.xlu0 %168  ;;  %183 = vperm.xlu0 %2884, %v92_v35  }
  0x99   :  { %vm460_vm9 = vcmp.eq.s32.totalorder %v3613_v4, %v3515_v36 }
  0x9a   :  { %2845 = vset.pattern.permute.xlu1 %v3121_v3  ;;  %vm508_vm14 = vmor %vm268_vm12, %vm460_vm9  ;;  %vm272_vm12 = vcmp.eq.s32.totalorder %v3613_v4, %v3485_v28 }
  0x9b   :  { %174 = vperm.xlu1 %2845, %v3311_v41  }
  0x9c   :  { %v3521_v11 = vpop.permute.xlu0 %171  ;;  %186 = vperm.xlu0 %2884, %v3330_v48  }
  0x9d   :  { %v3524_v38 = vpop.permute.xlu1 %132 }
  0x9e   :  { %vm269_vm15 = vcmp.eq.s32.totalorder %v3613_v4, %v3524_v38 }
  0x9f   :  { %2846 = vset.pattern.permute.xlu1 %v3122_v7 }
  0xa0   :  { %366 = vperm.xlu1 %2846, %v3311_v41   ;;  %198 = vperm.xlu0 %2884, %v3529_v12   ;;  %v3551_v41 = vld [vmem:[%s4547_s0 + $0xd8] sm:$0xff] }
  0xa1   :  { %v3534_v39 = vpop.permute.xlu0 %558 }
  0xa2   :  { %v3541_v42 = vpop.permute.xlu1 %564  ;;  %vm699_vm6 = vcmp.eq.s32.totalorder %v3613_v4, %v3534_v39 }
  0xa3   :  { %vm747_vm10 = vmor %vm507_vm8, %vm699_vm6  ;;  %vm271_vm8 = vcmp.eq.s32.totalorder %v3613_v4, %v3473_v25 }
  0xa4   :  { %2847 = vset.pattern.permute.xlu1 %v3121_v3  ;;  %201 = vperm.xlu0 %2884, %v3539_v40  }
  0xa5   :  { %177 = vperm.xlu1 %2847, %v3408_v14   ;;  %v3546_v43 = vpop.permute.xlu0 %561 }
  0xa6   :  { %vm700_vm11 = vcmp.eq.s32.totalorder %v3613_v4, %v3546_v43  ;;  %v3788_v43 = vld [vmem:[%s4547_s0 + $0x168] sm:$0xff] }
  0xa7   :  { %v3553_v44 = vpop.permute.xlu1 %135 }
  0xa8   :  { %204 = vperm.xlu0 %2884, %v3551_v41   ;;  %vm270_vm4 = vcmp.eq.s32.totalorder %v3613_v4, %v3553_v44 }
  0xa9   :  { %2848 = vset.pattern.permute.xlu1 %v3120_v2  ;;  %v3557_v45 = vpop.permute.xlu0 %573 }
  0xaa   :  { %609 = vperm.xlu1 %2848, %v3408_v14   ;;  %v3662_v14 = vld [vmem:[%s4547_s0 + $0x100] sm:$0xff] }
  0xac   :  { %v3565_v47 = vpop.permute.xlu1 %567  ;;  %207 = vperm.xlu0 %2884, %v3562_v46  }
  0xad   :  { %v3568_v49 = vpop.permute.xlu0 %576  ;;  %vm702_vm7 = vcmp.eq.s32.totalorder %v3613_v4, %v3565_v47 }
  0xae   :  { %2849 = vset.pattern.permute.xlu1 %v3121_v3 }
  0xaf   :  { %180 = vperm.xlu1 %2849, %v3415_v17  }
  0xb0   :  { %210 = vperm.xlu0 %2884, %v3579_v52  }
  0xb1   :  { %v3572_v50 = vpop.permute.xlu1 %330  ;;  %v3574_v51 = vpop.permute.xlu0 %588 }
  0xb2   :  { %vm463_vm9 = vcmp.eq.s32.totalorder %v3613_v4, %v3572_v50 }
  0xb3   :  { %2850 = vset.pattern.permute.xlu1 %v3120_v2 }
  0xb4   :  { %612 = vperm.xlu1 %2850, %v3415_v17   ;;  %213 = vperm.xlu0 %2884, %v3605_v62  }
  0xb5   :  { %v3584_v53 = vpop.permute.xlu0 %591 }
  0xb6   :  { %v3586_v54 = vpop.permute.xlu1 %570 }
  0xb8   :  { %2851 = vset.pattern.permute.xlu1 %v3122_v7 }
  0xb9   :  { %375 = vperm.xlu1 %2851, %v92_v35   ;;  %v3589_v56 = vpop.permute.xlu0 %603 }
  0xbb   :  { %v3591_v57 = vpop.permute.xlu1 %333 }
  0xbd   :  { %2852 = vset.pattern.permute.xlu1 %v3120_v2  ;;  %v3594_v58 = vpop.permute.xlu0 %606 }
  0xbe   :  { %615 = vperm.xlu1 %2852, %v92_v35  }
  0xc0   :  { %v3596_v59 = vpop.permute.xlu1 %144 }
  0xc1   :  { %v3598_v60 = vpop.permute.xlu0 %618 }
  0xc2   :  { %2853 = vset.pattern.permute.xlu1 %v3122_v7 }
  0xc3   :  { %378 = vperm.xlu1 %2853, %v3330_v48  }
  0xc5   :  { %v3607_v63 = vpop.permute.xlu1 %336  ;;  %v3609_v0 = vpop.permute.xlu0 %621 }
  0xc7   :  { %2854 = vset.pattern.permute.xlu1 %v3121_v3 }
  0xc8   :  { %189 = vperm.xlu1 %2854, %v3350_v55  }
  0xca   :  { %v3619_v48 = vpop.permute.xlu1 %147  ;;  %v316_v5 = vpop.permute.xlu0 %315 }
  0xcb   :  { %vm458_vm1 = vcmp.eq.s32.totalorder %v3613_v4, %v316_v5 }
  0xcc   :  { %vm506_vm3 = vmor %vm266_vm0, %vm458_vm1  ;;  %2855 = vset.pattern.permute.xlu1 %v3122_v7 }
  0xcd   :  { %381 = vperm.xlu1 %2855, %v3350_v55   ;;  %vm746_vm5 = vmor %vm506_vm3, %vm698_vm2  ;;  %v3646_v55 = vld [vmem:[%s4547_s0 + $0xf8] sm:$0xff]  ;;  %vm701_vm3 = vcmp.eq.s32.totalorder %v3613_v4, %v3541_v42 }
  0xce   :  { %2434 = vmatmul.mubr.msk.f32.vlgmr.msra.gmra.mrb[0].mxu0 %vm746_vm5, %v4556_v6  ;;  %v325_v9 = vpop.permute.xlu0 %324  ;;  %216 = vperm.xlu0 %2884, %v3646_v55   ;;  %vm748_vm0 = vmor %vm508_vm14, %vm700_vm11  ;;  %vm703_vm11 = vcmp.eq.s32.totalorder %v3613_v4, %v3586_v54 }
  0xcf   :  { %v3633_v16 = vpop.permute.xlu1 %579  ;;  %992 = vmatprep.mubr.f32.mxu0 %v4554_v15  ;;  %vm461_vm13 = vcmp.eq.s32.totalorder %v3613_v4, %v325_v9  ;;  %vm511_vm14 = vmor %vm271_vm8, %vm463_vm9  ;;  %vm274_vm8 = vcmp.eq.s32.totalorder %v3613_v4, %v3619_v48 }
  0xd0   :  { %vm509_vm1 = vmor %vm269_vm15, %vm461_vm13  ;;  %vm464_vm13 = vcmp.eq.s32.totalorder %v3613_v4, %v3591_v57 }
  0xd1   :  { %2857 = vset.pattern.permute.xlu1 %v3121_v3  ;;  %vm749_vm5 = vmor %vm509_vm1, %vm701_vm3  ;;  %vm273_vm3 = vcmp.eq.s32.totalorder %v3613_v4, %v3596_v59 }
  0xd2   :  { %192 = vperm.xlu1 %2857, %v3422_v8   ;;  %2435 = vmatmul.mubr.msk.f32.gmra.mrb[2].mxu0 %vm747_vm10, %v4556_v6  ;;  %v328_v1 = vpop.permute.xlu0 %327  ;;  %vm751_vm15 = vmor %vm511_vm14, %vm703_vm11 }
  0xd3   :  { %998 = vmatprep.mubr.f32.mxu0 %v4554_v15  ;;  %vm462_vm2 = vcmp.eq.s32.totalorder %v3613_v4, %v328_v1  ;;  %219 = vperm.xlu0 %2884, %v3662_v14   ;;  %vm512_vm1 = vmor %vm272_vm12, %vm464_vm13  ;;  %vm706_vm12 = vcmp.eq.s32.totalorder %v3613_v4, %v3633_v16 }
  0xd4   :  { %v3653_v13 = vpop.permute.xlu1 %150  ;;  %vm510_vm6 = vmor %vm270_vm4, %vm462_vm2  ;;  %vm465_vm2 = vcmp.eq.s32.totalorder %v3613_v4, %v3607_v63 }
  0xd5   :  { %vm750_vm10 = vmor %vm510_vm6, %vm702_vm7  ;;  %vm275_vm13 = vcmp.eq.s32.totalorder %v3613_v4, %v3653_v13 }
  0xd6   :  { %2858 = vset.pattern.permute.xlu1 %v3120_v2  ;;  %2436 = vmatmul.mubr.msk.f32.gmra.mrb[4].mxu0 %vm748_vm0, %v4556_v6  ;;  %v340_v23 = vpop.permute.xlu0 %339  ;;  %vm704_vm0 = vcmp.eq.s32.totalorder %v3613_v4, %v3557_v45  ;;  %vm513_vm6 = vmor %vm273_vm3, %vm465_vm2  ;;  %v3803_v45 = vld [vmem:[%s4547_s0 + $0x170] sm:$0xff] }
  0xd7   :  { %624 = vperm.xlu1 %2858, %v3422_v8   ;;  %1004 = vmatprep.mubr.f32.mxu0 %v4554_v15  ;;  %v3678_v8 = vld [vmem:[%s4547_s0 + $0x148] sm:$0xff]  ;;  %vm752_vm4 = vmor %vm512_vm1, %vm704_vm0  ;;  %vm466_vm7 = vcmp.eq.s32.totalorder %v3613_v4, %v340_v23  ;;  %vm276_vm1 = vcmp.eq.s32.totalorder %v3613_v4, %v3496_v31 }
  0xd8   :  { %246 = vperm.xlu0 %2884, %v3678_v8  }
  0xd9   :  { %v3672_v17 = vpop.permute.xlu1 %582 }
  0xda   :  { %2437 = vmatmul.mubr.msk.f32.gmra.mrb[6].mxu0 %vm749_vm5, %v4556_v6  ;;  %v343_v28 = vpop.permute.xlu0 %342  ;;  %vm705_vm5 = vcmp.eq.s32.totalorder %v3613_v4, %v3568_v49  ;;  %vm707_vm0 = vcmp.eq.s32.totalorder %v3613_v4, %v3672_v17  ;;  %v3818_v49 = vld [vmem:[%s4547_s0 + $0x178] sm:$0xff] }
  0xdb   :  { %2859 = vset.pattern.permute.xlu1 %v3121_v3  ;;  %1010 = vmatprep.mubr.f32.mxu0 %v4554_v15  ;;  %vm753_vm9 = vmor %vm513_vm6, %vm705_vm5  ;;  %vm467_vm11 = vcmp.eq.s32.totalorder %v3613_v4, %v343_v28  ;;  %vm277_vm5 = vcmp.eq.s32.totalorder %v3613_v4, %v3507_v34 }
  0xdc   :  { %195 = vperm.xlu1 %2859, %v3430_v18   ;;  %249 = vperm.xlu0 %2884, %v3693_v22  }
  0xde   :  { %v346_v27 = vpop.permute.xlu1 %345  ;;  %2438 = vmatmul.mubr.msk.f32.gmra.mrb[8].mxu0 %vm750_vm10, %v4556_v6  ;;  %v3723_v30 = vpop.permute.xlu0 %354  ;;  %vm514_vm10 = vmor %vm274_vm8, %vm466_vm7 }
  0xdf   :  { %1016 = vmatprep.mubr.f32.mxu0 %v4554_v15  ;;  %vm754_vm14 = vmor %vm514_vm10, %vm706_vm12  ;;  %vm468_vm2 = vcmp.eq.s32.totalorder %v3613_v4, %v346_v27 }
  0xe0   :  { %2860 = vset.pattern.permute.xlu1 %v3120_v2  ;;  %2889 = vset.pattern.permute.xlu0 %v3120_v2  ;;  %vm516_vm7 = vmor %vm276_vm1, %vm468_vm2  ;;  %vm471_vm1 = vcmp.eq.s32.totalorder %v3613_v4, %v3723_v30 }
  0xe1   :  { %627 = vperm.xlu1 %2860, %v3430_v18   ;;  %681 = vperm.xlu0 %2889, %v3693_v22  }
  0xe2   :  { %2439 = vmatmul.mubr.msk.f32.gmra.mrb[10].mxu0 %vm751_vm15, %v4556_v6  ;;  %v3734_v33 = vpop.permute.xlu0 %357  ;;  %vm515_vm15 = vmor %vm275_vm13, %vm467_vm11 }
  0xe3   :  { %v586_v25 = vpop.permute.xlu1 %585  ;;  %1022 = vmatprep.mubr.f32.mxu0 %v4554_v15  ;;  %vm755_vm3 = vmor %vm515_vm15, %vm707_vm0 }
  0xe5   :  { %2861 = vset.pattern.permute.xlu1 %v3122_v7 }
  0xe6   :  { %390 = vperm.xlu1 %2861, %v3529_v12   ;;  %2440 = vmatmul.mubr.msk.f32.gmra.mrb[12].mxu0 %vm752_vm4, %v4556_v6  ;;  %v3744_v36 = vpop.permute.xlu0 %369  ;;  %vm708_vm4 = vcmp.eq.s32.totalorder %v3613_v4, %v586_v25 }
  0xe7   :  { %1028 = vmatprep.mubr.f32.mxu0 %v4554_v15  ;;  %vm756_vm8 = vmor %vm516_vm7, %vm708_vm4  ;;  %vm472_vm7 = vcmp.eq.s32.totalorder %v3613_v4, %v3734_v33 }
  0xe8   :  { %v349_v18 = vpop.permute.xlu1 %348 }
  0xe9   :  { %vm469_vm6 = vcmp.eq.s32.totalorder %v3613_v4, %v349_v18 }
  0xea   :  { %2862 = vset.pattern.permute.xlu1 %v3121_v3  ;;  %2441 = vmatmul.mubr.msk.f32.gmra.mrb[14].mxu0 %vm753_vm9, %v4556_v6  ;;  %vm709_vm9 = vcmp.eq.s32.totalorder %v3613_v4, %v3574_v51  ;;  %vm517_vm10 = vmor %vm277_vm5, %vm469_vm6  ;;  %v3765_v31 = vpop.permute.xlu0 %372 }
  0xeb   :  { %222 = vperm.xlu1 %2862, %v3438_v10   ;;  %1034 = vmatprep.mubr.f32.mxu0 %v4554_v15  ;;  %vm757_vm13 = vmor %vm517_vm10, %vm709_vm9 }
  0xed   :  { %v160_v35 = vpop.permute.xlu1 %159 }
  0xee   :  { %2442 = vmatmul.mubr.msk.f32.gmra.mrb[16].mxu0 %vm754_vm14, %v4556_v6  ;;  %vm278_vm12 = vcmp.eq.s32.totalorder %v3613_v4, %v160_v35  ;;  %vm710_vm14 = vcmp.eq.s32.totalorder %v3613_v4, %v3584_v53  ;;  %v3783_v42 = vpop.permute.xlu0 %384 }
  0xef   :  { %2863 = vset.pattern.permute.xlu1 %v3120_v2  ;;  %1040 = vmatprep.mubr.f32.mxu0 %v4554_v15 }
  0xf0   :  { %630 = vperm.xlu1 %2863, %v3529_v12   ;;  %v3758_v12 = vld [vmem:[%s4547_s0 + $0x158] sm:$0xff] }
  0xf1   :  { %684 = vperm.xlu0 %2889, %v3758_v12  }
  0xf2   :  { %v352_v38 = vpop.permute.xlu1 %351  ;;  %2443 = vmatmul.mubr.msk.f32.gmra.mrb[18].mxu0 %vm755_vm3, %v4556_v6  ;;  %v3807_v47 = vpop.permute.xlu0 %387 }
  0xf3   :  { %1046 = vmatprep.mubr.f32.mxu0 %v4554_v15  ;;  %vm470_vm11 = vcmp.eq.s32.totalorder %v3613_v4, %v352_v38 }
  0xf4   :  { %654 = vperm.xlu1 %2863, %v3438_v10   ;;  %v3774_v10 = vld [vmem:[%s4547_s0 + $0x160] sm:$0xff]  ;;  %vm518_vm15 = vmor %vm278_vm12, %vm470_vm11  ;;  %vm281_vm11 = vcmp.eq.s32.totalorder %v3613_v4, %v3517_v37 }
  0xf5   :  { %2893 = vset.pattern.permute.xlu0 %v3122_v7  ;;  %vm758_vm2 = vmor %vm518_vm15, %vm710_vm14 }
  0xf6   :  { %2444 = vmatmul.mubr.msk.f32.gmra.mrb[20].mxu0 %vm756_vm8, %v4556_v6  ;;  %447 = vperm.xlu0 %2893, %v3774_v10  }
  0xf7   :  { %v163_v34 = vpop.permute.xlu1 %162  ;;  %1052 = vmatprep.mubr.f32.mxu0 %v4554_v15 }
  0xf8   :  { %2864 = vset.pattern.permute.xlu1 %v3122_v7  ;;  %vm279_vm0 = vcmp.eq.s32.totalorder %v3613_v4, %v163_v34 }
  0xf9   :  { %393 = vperm.xlu1 %2864, %v3539_v40   ;;  %vm519_vm4 = vmor %vm279_vm0, %vm471_vm1  ;;  %vm282_vm0 = vcmp.eq.s32.totalorder %v3613_v4, %v3521_v11  ;;  %vm714_vm1 = vcmp.eq.s32.totalorder %v3613_v4, %v3589_v56 }
  0xfa   :  { %2445 = vmatmul.mubr.msk.f32.gmra.mrb[22].mxu0 %vm757_vm13, %v4556_v6  ;;  %450 = vperm.xlu0 %2893, %v3788_v43  }
  0xfb   :  { %1058 = vmatprep.mubr.f32.mxu0 %v4554_v15 }
  0xfc   :  { %v595_v39 = vpop.permute.xlu1 %594 }
  0xfd   :  { %2865 = vset.pattern.permute.xlu1 %v3121_v3  ;;  %vm711_vm3 = vcmp.eq.s32.totalorder %v3613_v4, %v595_v39 }
  0xfe   :  { %225 = vperm.xlu1 %2865, %v3445_v19   ;;  %2446 = vmatmul.mubr.msk.f32.gmra.mrb[24].mxu0 %vm758_vm2, %v4556_v6  ;;  %vm759_vm5 = vmor %vm519_vm4, %vm711_vm3 }
  0xff   :  { %1064 = vmatprep.mubr.f32.mxu0 %v4554_v15  ;;  %2897 = vset.pattern.permute.xlu0 %v3121_v3 }
 0x100   :  { %261 = vperm.xlu0 %2897, %v3803_v45  }
 0x101   :  { %v166_v44 = vpop.permute.xlu1 %165 }
 0x102   :  { %2866 = vset.pattern.permute.xlu1 %v3120_v2  ;;  %2447 = vmatmul.mubr.msk.f32.gmra.mrb[26].mxu0 %vm759_vm5, %v4556_v6  ;;  %vm280_vm6 = vcmp.eq.s32.totalorder %v3613_v4, %v166_v44  ;;  %vm715_vm5 = vcmp.eq.s32.totalorder %v3613_v4, %v3594_v58  ;;  %v4008_v44 = vld [vmem:[%s4550_s3] ss:$0 sm:$0xff] }
 0x103   :  { %633 = vperm.xlu1 %2866, %v3539_v40   ;;  %1070 = vmatprep.mubr.f32.mxu0 %v4554_v15  ;;  %vm520_vm8 = vmor %vm280_vm6, %vm472_vm7  ;;  %v3822_v40 = vpop.permute.xlu0 %414 }
 0x104   :  { %264 = vperm.xlu0 %2897, %v3818_v49  }
 0x106   :  { %v598_v50 = vpop.permute.xlu1 %597 }
 0x107   :  { %vm712_vm9 = vcmp.eq.s32.totalorder %v3613_v4, %v598_v50  ;;  %657 = vperm.xlu1 %2866, %v3445_v19   ;;  %v3834_v19 = vpop.permute.xlu0 %417 }
 0x108   :  { %vm760_vm10 = vmor %vm520_vm8, %vm712_vm9  ;;  %2901 = vset.pattern.permute.xlu0 %v3120_v2 }
 0x109   :  { %2448 = vmatmul.mubr.msk.f32.gmra.mrb[28].mxu0 %vm760_vm10, %v4556_v6  ;;  %696 = vperm.xlu0 %2901, %v3818_v49   ;;  %vm476_vm10 = vcmp.eq.s32.totalorder %v3613_v4, %v3744_v36 }
 0x10a   :  { %1076 = vmatprep.mubr.f32.mxu0 %v4554_v15 }
 0x10b   :  { %2867 = vset.pattern.permute.xlu1 %v3122_v7  ;;  %v361_v51 = vpop.permute.xlu1 %360  ;;  %v3844_v37 = vpop.permute.xlu0 %420 }
 0x10c   :  { %396 = vperm.xlu1 %2867, %v3551_v41   ;;  %vm473_vm12 = vcmp.eq.s32.totalorder %v3613_v4, %v361_v51 }
 0x10d   :  { %vm521_vm13 = vmor %vm281_vm11, %vm473_vm12  ;;  %2903 = vset.pattern.permute.xlu0 %v3121_v3 }
 0x10f   :  { %v3854_v57 = vpop.permute.xlu0 %423 }
 0x110   :  { %2868 = vset.pattern.permute.xlu1 %v3121_v3  ;;  %v601_v53 = vpop.permute.xlu1 %600 }
 0x111   :  { %vm713_vm14 = vcmp.eq.s32.totalorder %v3613_v4, %v601_v53  ;;  %228 = vperm.xlu1 %2868, %v3452_v20  }
 0x112   :  { %vm761_vm15 = vmor %vm521_vm13, %vm713_vm14 }
 0x113   :  { %2449 = vmatmul.mubr.msk.f32.gmra.mrb[30].mxu0 %vm761_vm15, %v4556_v6  ;;  %vm477_vm15 = vcmp.eq.s32.totalorder %v3613_v4, %v3765_v31 }
 0x114   :  { %1082 = vmatprep.mubr.f32.mxu0 %v4554_v15 }
 0x115   :  { %2869 = vset.pattern.permute.xlu1 %v3120_v2  ;;  %v364_v54 = vpop.permute.xlu1 %363 }
 0x116   :  { %vm474_vm2 = vcmp.eq.s32.totalorder %v3613_v4, %v364_v54  ;;  %636 = vperm.xlu1 %2869, %v3551_v41   ;;  %v3862_v41 = vpop.permute.xlu0 %426 }
 0x117   :  { %vm522_vm3 = vmor %vm282_vm0, %vm474_vm2 }
 0x118   :  { %vm762_vm4 = vmor %vm522_vm3, %vm714_vm1 }
 0x119   :  { %2450 = vmatmul.mubr.msk.f32.gmra.mrb[32].mxu0 %vm762_vm4, %v4556_v6 }
 0x11a   :  { %660 = vperm.xlu1 %2869, %v3452_v20   ;;  %v175_v11 = vpop.permute.xlu1 %174  ;;  %1088 = vmatprep.mubr.f32.mxu0 %v4554_v15  ;;  %v3868_v58 = vpop.permute.xlu0 %429 }
 0x11b   :  { %vm283_vm6 = vcmp.eq.s32.totalorder %v3613_v4, %v175_v11 }
 0x11e   :  { %2870 = vset.pattern.permute.xlu1 %v3122_v7  ;;  %v3877_v63 = vpop.permute.xlu0 %432 }
 0x11f   :  { %399 = vperm.xlu1 %2870, %v3562_v46   ;;  %v367_v56 = vpop.permute.xlu1 %366 }
 0x120   :  { %vm475_vm7 = vcmp.eq.s32.totalorder %v3613_v4, %v367_v56 }
 0x121   :  { %vm523_vm8 = vmor %vm283_vm6, %vm475_vm7 }
 0x122   :  { %vm763_vm9 = vmor %vm523_vm8, %vm715_vm5 }
 0x123   :  { %2871 = vset.pattern.permute.xlu1 %v3121_v3  ;;  %2451 = vmatmul.mubr.msk.f32.gmra.mrb[34].mxu0 %vm763_vm9, %v4556_v6 }
 0x124   :  { %231 = vperm.xlu1 %2871, %v3458_v21   ;;  %v178_v20 = vpop.permute.xlu1 %177  ;;  %1094 = vmatprep.mubr.f32.mxu0 %v4554_v15 }
 0x125   :  { %vm284_vm11 = vcmp.eq.s32.totalorder %v3613_v4, %v178_v20 }
 0x126   :  { %vm524_vm12 = vmor %vm284_vm11, %vm476_vm10  ;;  %vm719_vm10 = vcmp.eq.s32.totalorder %v3613_v4, %v3598_v60 }
 0x128   :  { %2872 = vset.pattern.permute.xlu1 %v3120_v2 }
 0x129   :  { %639 = vperm.xlu1 %2872, %v3562_v46   ;;  %v610_v59 = vpop.permute.xlu1 %609  ;;  %v3886_v46 = vpop.permute.xlu0 %435 }
 0x12a   :  { %vm716_vm13 = vcmp.eq.s32.totalorder %v3613_v4, %v610_v59 }
 0x12b   :  { %vm764_vm14 = vmor %vm524_vm12, %vm716_vm13 }
 0x12c   :  { %2452 = vmatmul.mubr.msk.f32.gmra.mrb[36].mxu0 %vm764_vm14, %v4556_v6  ;;  %vm720_vm14 = vcmp.eq.s32.totalorder %v3613_v4, %v3609_v0 }
 0x12d   :  { %663 = vperm.xlu1 %2872, %v3458_v21   ;;  %1100 = vmatprep.mubr.f32.mxu0 %v4554_v15  ;;  %v184_v9 = vpop.permute.xlu0 %183 }
 0x12e   :  { %v181_v48 = vpop.permute.xlu1 %180  ;;  %vm286_vm5 = vcmp.eq.s32.totalorder %v3613_v4, %v184_v9 }
 0x12f   :  { %vm285_vm0 = vcmp.eq.s32.totalorder %v3613_v4, %v181_v48 }
 0x130   :  { %vm525_vm1 = vmor %vm285_vm0, %vm477_vm15 }
 0x131   :  { %2873 = vset.pattern.permute.xlu1 %v3122_v7  ;;  %v187_v1 = vpop.permute.xlu0 %186 }
 0x132   :  { %402 = vperm.xlu1 %2873, %v3579_v52   ;;  %vm287_vm9 = vcmp.eq.s32.totalorder %v3613_v4, %v187_v1 }
 0x133   :  { %v613_v5 = vpop.permute.xlu1 %612 }
 0x134   :  { %vm717_vm2 = vcmp.eq.s32.totalorder %v3613_v4, %v613_v5 }
 0x135   :  { %vm765_vm3 = vmor %vm525_vm1, %vm717_vm2  ;;  %v199_v23 = vpop.permute.xlu0 %198 }
 0x136   :  { %2874 = vset.pattern.permute.xlu1 %v3121_v3  ;;  %2453 = vmatmul.mubr.msk.f32.gmra.mrb[38].mxu0 %vm765_vm3, %v4556_v6  ;;  %vm481_vm3 = vcmp.eq.s32.totalorder %v3613_v4, %v3783_v42 }
 0x137   :  { %234 = vperm.xlu1 %2874, %v3469_v24   ;;  %1106 = vmatprep.mubr.f32.mxu0 %v4554_v15 }
 0x138   :  { %v376_v21 = vpop.permute.xlu1 %375 }
 0x139   :  { %vm478_vm4 = vcmp.eq.s32.totalorder %v3613_v4, %v376_v21  ;;  %v202_v28 = vpop.permute.xlu0 %201 }
 0x13a   :  { %vm526_vm6 = vmor %vm286_vm5, %vm478_vm4 }
 0x13b   :  { %2875 = vset.pattern.permute.xlu1 %v3120_v2 }
 0x13c   :  { %642 = vperm.xlu1 %2875, %v3579_v52  }
 0x13d   :  { %v616_v16 = vpop.permute.xlu1 %615  ;;  %v205_v30 = vpop.permute.xlu0 %204 }
 0x13e   :  { %vm718_vm7 = vcmp.eq.s32.totalorder %v3613_v4, %v616_v16 }
 0x13f   :  { %vm766_vm8 = vmor %vm526_vm6, %vm718_vm7 }
 0x140   :  { %666 = vperm.xlu1 %2875, %v3469_v24   ;;  %2454 = vmatmul.mubr.msk.f32.gmra.mrb[40].mxu0 %vm766_vm8, %v4556_v6  ;;  %vm482_vm8 = vcmp.eq.s32.totalorder %v3613_v4, %v3807_v47 }
 0x141   :  { %1112 = vmatprep.mubr.f32.mxu0 %v4554_v15  ;;  %v208_v31 = vpop.permute.xlu0 %207 }
 0x142   :  { %v379_v13 = vpop.permute.xlu1 %378 }
 0x143   :  { %vm479_vm11 = vcmp.eq.s32.totalorder %v3613_v4, %v379_v13 }
 0x144   :  { %vm527_vm12 = vmor %vm287_vm9, %vm479_vm11  ;;  %2876 = vset.pattern.permute.xlu1 %v3122_v7 }
 0x145   :  { %405 = vperm.xlu1 %2876, %v3605_v62   ;;  %vm767_vm13 = vmor %vm527_vm12, %vm719_vm10  ;;  %v211_v20 = vpop.permute.xlu0 %210 }
 0x146   :  { %2455 = vmatmul.mubr.msk.f32.gmra.mrb[42].mxu0 %vm767_vm13, %v4556_v6 }
 0x147   :  { %v190_v24 = vpop.permute.xlu1 %189  ;;  %1118 = vmatprep.mubr.f32.mxu0 %v4554_v15 }
 0x148   :  { %vm288_vm15 = vcmp.eq.s32.totalorder %v3613_v4, %v190_v24 }
 0x149   :  { %2877 = vset.pattern.permute.xlu1 %v3121_v3 }
 0x14a   :  { %237 = vperm.xlu1 %2877, %v3478_v26  }
 0x14c   :  { %v382_v52 = vpop.permute.xlu1 %381 }
 0x14d   :  { %vm480_vm0 = vcmp.eq.s32.totalorder %v3613_v4, %v382_v52 }
 0x14e   :  { %vm528_vm1 = vmor %vm288_vm15, %vm480_vm0  ;;  %2878 = vset.pattern.permute.xlu1 %v3120_v2 }
 0x14f   :  { %645 = vperm.xlu1 %2878, %v3605_v62   ;;  %vm768_vm2 = vmor %vm528_vm1, %vm720_vm14  ;;  %vm291_vm14 = vcmp.eq.s32.totalorder %v3613_v4, %v199_v23  ;;  %vm491_vm1 = vcmp.eq.s32.totalorder %v3613_v4, %v3822_v40 }
 0x150   :  { %2456 = vmatmul.mubr.msk.f32.gmra.mrb[44].mxu0 %vm768_vm2, %v4556_v6 }
 0x151   :  { %v193_v60 = vpop.permute.xlu1 %192  ;;  %1124 = vmatprep.mubr.f32.mxu0 %v4554_v15 }
 0x152   :  { %vm289_vm4 = vcmp.eq.s32.totalorder %v3613_v4, %v193_v60 }
 0x153   :  { %669 = vperm.xlu1 %2878, %v3478_v26   ;;  %vm529_vm5 = vmor %vm289_vm4, %vm481_vm3 }
 0x156   :  { %v625_v0 = vpop.permute.xlu1 %624 }
 0x157   :  { %vm721_vm6 = vcmp.eq.s32.totalorder %v3613_v4, %v625_v0  ;;  %2879 = vset.pattern.permute.xlu1 %v3122_v7 }
 0x158   :  { %vm769_vm7 = vmor %vm529_vm5, %vm721_vm6  ;;  %408 = vperm.xlu1 %2879, %v3646_v55  }
 0x159   :  { %2457 = vmatmul.mubr.msk.f32.gmra.mrb[46].mxu0 %vm769_vm7, %v4556_v6 }
 0x15a   :  { %1130 = vmatprep.mubr.f32.mxu0 %v4554_v15 }
 0x15b   :  { %v196_v62 = vpop.permute.xlu1 %195 }
 0x15c   :  { %2880 = vset.pattern.permute.xlu1 %v3121_v3  ;;  %vm290_vm9 = vcmp.eq.s32.totalorder %v3613_v4, %v196_v62 }
 0x15d   :  { %240 = vperm.xlu1 %2880, %v3490_v29   ;;  %vm530_vm10 = vmor %vm290_vm9, %vm482_vm8  ;;  %vm292_vm8 = vcmp.eq.s32.totalorder %v3613_v4, %v202_v28 }
 0x160   :  { %v628_v26 = vpop.permute.xlu1 %627 }
 0x161   :  { %vm722_vm11 = vcmp.eq.s32.totalorder %v3613_v4, %v628_v26  ;;  %2881 = vset.pattern.permute.xlu1 %v3120_v2  ;;  %v214_v26 = vpop.permute.xlu0 %213 }
 0x162   :  { %vm770_vm12 = vmor %vm530_vm10, %vm722_vm11  ;;  %648 = vperm.xlu1 %2881, %v3646_v55   ;;  %vm492_vm11 = vcmp.eq.s32.totalorder %v3613_v4, %v3834_v19 }
 0x163   :  { %2458 = vmatmul.mubr.msk.f32.gmra.mrb[48].mxu0 %vm770_vm12, %v4556_v6 }
 0x164   :  { %1136 = vmatprep.mubr.f32.mxu0 %v4554_v15 }
 0x165   :  { %v391_v17 = vpop.permute.xlu1 %390 }
 0x166   :  { %672 = vperm.xlu1 %2881, %v3490_v29   ;;  %vm483_vm13 = vcmp.eq.s32.totalorder %v3613_v4, %v391_v17 }
 0x167   :  { %vm531_vm15 = vmor %vm291_vm14, %vm483_vm13 }
 0x16a   :  { %2882 = vset.pattern.permute.xlu1 %v3121_v3  ;;  %v223_v27 = vpop.permute.xlu1 %222 }
 0x16b   :  { %243 = vperm.xlu1 %2882, %v3501_v32   ;;  %vm299_vm2 = vcmp.eq.s32.totalorder %v3613_v4, %v223_v27 }
 0x16c   :  { %vm539_vm4 = vmor %vm299_vm2, %vm491_vm1  ;;  %vm293_vm2 = vcmp.eq.s32.totalorder %v3613_v4, %v205_v30 }
 0x16f   :  { %2883 = vset.pattern.permute.xlu1 %v3122_v7  ;;  %v631_v55 = vpop.permute.xlu1 %630 }
 0x170   :  { %vm723_vm0 = vcmp.eq.s32.totalorder %v3613_v4, %v631_v55  ;;  %411 = vperm.xlu1 %2883, %v3662_v14  }
 0x171   :  { %vm771_vm3 = vmor %vm531_vm15, %vm723_vm0 }
 0x172   :  { %2459 = vmatmul.mubr.msk.f32.gmra.mrb[50].mxu0 %vm771_vm3, %v4556_v6 }
 0x173   :  { %v655_v29 = vpop.permute.xlu1 %654  ;;  %1142 = vmatprep.mubr.f32.mxu0 %v4554_v15 }
 0x174   :  { %vm731_vm5 = vcmp.eq.s32.totalorder %v3613_v4, %v655_v29  ;;  %2885 = vset.pattern.permute.xlu1 %v3120_v2 }
 0x175   :  { %vm779_vm6 = vmor %vm539_vm4, %vm731_vm5  ;;  %651 = vperm.xlu1 %2885, %v3662_v14  }
 0x176   :  { %2467 = vmatmul.mubr.msk.f32.vlgmr.msra.gmra.mrb[0].mxu1 %vm779_vm6, %v4556_v6 }
 0x177   :  { %1190 = vmatprep.mubr.f32.mxu1 %v4554_v15 }
 0x178   :  { %v394_v25 = vpop.permute.xlu1 %393 }
 0x179   :  { %675 = vperm.xlu1 %2885, %v3501_v32   ;;  %vm484_vm7 = vcmp.eq.s32.totalorder %v3613_v4, %v394_v25 }
 0x17a   :  { %vm532_vm9 = vmor %vm292_vm8, %vm484_vm7  ;;  %vm493_vm7 = vcmp.eq.s32.totalorder %v3613_v4, %v3844_v37 }
 0x17d   :  { %2886 = vset.pattern.permute.xlu1 %v3122_v7  ;;  %v226_v18 = vpop.permute.xlu1 %225 }
 0x17e   :  { %438 = vperm.xlu1 %2886, %v3678_v8   ;;  %vm300_vm12 = vcmp.eq.s32.totalorder %v3613_v4, %v226_v18 }
 0x17f   :  { %vm540_vm14 = vmor %vm300_vm12, %vm492_vm11  ;;  %vm294_vm12 = vcmp.eq.s32.totalorder %v3613_v4, %v208_v31 }
 0x182   :  { %2887 = vset.pattern.permute.xlu1 %v3120_v2  ;;  %v634_v14 = vpop.permute.xlu1 %633 }
 0x183   :  { %vm724_vm10 = vcmp.eq.s32.totalorder %v3613_v4, %v634_v14  ;;  %678 = vperm.xlu1 %2887, %v3678_v8  }
 0x184   :  { %vm772_vm13 = vmor %vm532_vm9, %vm724_vm10 }
 0x185   :  { %2460 = vmatmul.mubr.msk.f32.gmra.mrb[52].mxu0 %vm772_vm13, %v4556_v6 }
 0x186   :  { %v658_v32 = vpop.permute.xlu1 %657  ;;  %1148 = vmatprep.mubr.f32.mxu0 %v4554_v15 }
 0x187   :  { %vm732_vm15 = vcmp.eq.s32.totalorder %v3613_v4, %v658_v32  ;;  %2888 = vset.pattern.permute.xlu1 %v3122_v7 }
 0x188   :  { %vm780_vm0 = vmor %vm540_vm14, %vm732_vm15  ;;  %441 = vperm.xlu1 %2888, %v3693_v22  }
 0x189   :  { %2468 = vmatmul.mubr.msk.f32.gmra.mrb[2].mxu1 %vm780_vm0, %v4556_v6 }
 0x18a   :  { %1196 = vmatprep.mubr.f32.mxu1 %v4554_v15 }
 0x18b   :  { %v397_v8 = vpop.permute.xlu1 %396 }
 0x18c   :  { %2890 = vset.pattern.permute.xlu1 %v3121_v3  ;;  %vm485_vm1 = vcmp.eq.s32.totalorder %v3613_v4, %v397_v8 }
 0x18d   :  { %252 = vperm.xlu1 %2890, %v3758_v12   ;;  %vm533_vm3 = vmor %vm293_vm2, %vm485_vm1  ;;  %vm494_vm1 = vcmp.eq.s32.totalorder %v3613_v4, %v3854_v57 }
 0x190   :  { %v229_v33 = vpop.permute.xlu1 %228 }
 0x191   :  { %2891 = vset.pattern.permute.xlu1 %v3122_v7  ;;  %vm301_vm5 = vcmp.eq.s32.totalorder %v3613_v4, %v229_v33 }
 0x192   :  { %444 = vperm.xlu1 %2891, %v3758_v12   ;;  %vm541_vm8 = vmor %vm301_vm5, %vm493_vm7 }
 0x195   :  { %v637_v22 = vpop.permute.xlu1 %636 }
 0x196   :  { %vm725_vm4 = vcmp.eq.s32.totalorder %v3613_v4, %v637_v22  ;;  %2892 = vset.pattern.permute.xlu1 %v3121_v3 }
 0x197   :  { %vm773_vm6 = vmor %vm533_vm3, %vm725_vm4  ;;  %255 = vperm.xlu1 %2892, %v3774_v10  }
 0x198   :  { %2461 = vmatmul.mubr.msk.f32.gmra.mrb[54].mxu0 %vm773_vm6, %v4556_v6  ;;  %vm295_vm6 = vcmp.eq.s32.totalorder %v3613_v4, %v211_v20 }
 0x199   :  { %v661_v35 = vpop.permute.xlu1 %660  ;;  %1154 = vmatprep.mubr.f32.mxu0 %v4554_v15 }
 0x19a   :  { %vm733_vm9 = vcmp.eq.s32.totalorder %v3613_v4, %v661_v35 }
 0x19b   :  { %vm781_vm10 = vmor %vm541_vm8, %vm733_vm9  ;;  %2894 = vset.pattern.permute.xlu1 %v3120_v2 }
 0x19c   :  { %687 = vperm.xlu1 %2894, %v3774_v10   ;;  %2469 = vmatmul.mubr.msk.f32.gmra.mrb[4].mxu1 %vm781_vm10, %v4556_v6 }
 0x19d   :  { %1202 = vmatprep.mubr.f32.mxu1 %v4554_v15 }
 0x19e   :  { %v400_v36 = vpop.permute.xlu1 %399 }
 0x19f   :  { %vm486_vm11 = vcmp.eq.s32.totalorder %v3613_v4, %v400_v36 }
 0x1a0   :  { %2895 = vset.pattern.permute.xlu1 %v3121_v3  ;;  %vm534_vm13 = vmor %vm294_vm12, %vm486_vm11  ;;  %vm495_vm11 = vcmp.eq.s32.totalorder %v3613_v4, %v3862_v41 }
 0x1a1   :  { %258 = vperm.xlu1 %2895, %v3788_v43   ;;  %v3995_v38 = vpop.f32.mrb[0].mxu0 }
 0x1a2   :  { %v3997_v12 = vpop.f32.mrb[1].mxu0  ;;  %v1275_v33 = vmax.f32 %v3995_v38, 0.0 }
 0x1a3   :  { %v232_v34 = vpop.permute.xlu1 %231 }
 0x1a4   :  { %vm302_vm15 = vcmp.eq.s32.totalorder %v3613_v4, %v232_v34 }
 0x1a5   :  { %2896 = vset.pattern.permute.xlu1 %v3120_v2  ;;  %v994_v39 = vpop.f32.mrb[2].mxu0  ;;  %vm542_vm2 = vmor %vm302_vm15, %vm494_vm1 }
 0x1a6   :  { %v1276_v10 = vmax.f32 %v994_v39, 0.0  ;;  %690 = vperm.xlu1 %2896, %v3788_v43   ;;  %v4003_v42 = vpop.f32.mrb[3].mxu0 }
 0x1a8   :  { %v1331_v47 = vmul.f32 %v4008_v44, %v1276_v10  ;;  %v640_v50 = vpop.permute.xlu1 %639 }
 0x1a9   :  { %vm726_vm14 = vcmp.eq.s32.totalorder %v3613_v4, %v640_v50  ;;  %v4012_v40 = vpop.f32.mrb[4].mxu0  ;;  %v217_v50 = vpop.permute.xlu0 %216 }
 0x1aa   :  { %vm774_vm0 = vmor %vm534_vm13, %vm726_vm14  ;;  %2898 = vset.pattern.permute.xlu1 %v3122_v7  ;;  %1380 = vadd.xlane.f32.xlu0 %v1331_v47  ;;  %v4016_v43 = vpop.f32.mrb[5].mxu0  ;;  %v1277_v36 = vmax.f32 %v4012_v40, 0.0 }
 0x1ab   :  { %453 = vperm.xlu1 %2898, %v3803_v45   ;;  %2462 = vmatmul.mubr.msk.f32.gmra.mrb[56].mxu0 %vm774_vm0, %v4556_v6  ;;  %vm296_vm0 = vcmp.eq.s32.totalorder %v3613_v4, %v214_v26 }
 0x1ac   :  { %v664_v51 = vpop.permute.xlu1 %663  ;;  %1160 = vmatprep.mubr.f32.mxu0 %v4554_v15  ;;  %v1332_v38 = vmul.f32 %v4008_v44, %v1277_v36 }
 0x1ad   :  { %vm734_vm3 = vcmp.eq.s32.totalorder %v3613_v4, %v664_v51  ;;  %v1006_v19 = vpop.f32.mrb[6].mxu0 }
 0x1ae   :  { %vm782_vm4 = vmor %vm542_vm2, %vm734_vm3  ;;  %v1278_v53 = vmax.f32 %v1006_v19, 0.0  ;;  %v4024_v37 = vpop.f32.mrb[7].mxu0 }
 0x1af   :  { %2899 = vset.pattern.permute.xlu1 %v3120_v2  ;;  %2470 = vmatmul.mubr.msk.f32.gmra.mrb[6].mxu1 %vm782_vm4, %v4556_v6 }
 0x1b0   :  { %v1333_v54 = vmul.f32 %v4008_v44, %v1278_v53  ;;  %693 = vperm.xlu1 %2899, %v3803_v45   ;;  %1208 = vmatprep.mubr.f32.mxu1 %v4554_v15 }
 0x1b1   :  { %v403_v11 = vpop.permute.xlu1 %402  ;;  %v4031_v57 = vpop.f32.mrb[8].mxu0 }
 0x1b2   :  { %1384 = vadd.xlane.f32.xlu0 %v1333_v54  ;;  %v4033_v56 = vpop.f32.mrb[9].mxu0  ;;  %vm487_vm5 = vcmp.eq.s32.totalorder %v3613_v4, %v403_v11  ;;  %v1279_v34 = vmax.f32 %v4031_v57, 0.0 }
 0x1b3   :  { %vm535_vm7 = vmor %vm295_vm6, %vm487_vm5  ;;  %vm496_vm5 = vcmp.eq.s32.totalorder %v3613_v4, %v3868_v58  ;;  %v1330_v58 = vmul.f32 %v4008_v44, %v1275_v33 }
 0x1b4   :  { %2900 = vset.pattern.permute.xlu1 %v3122_v7  ;;  %v1334_v51 = vmul.f32 %v4008_v44, %v1279_v34 }
 0x1b5   :  { %456 = vperm.xlu1 %2900, %v3818_v49   ;;  %v1018_v2 = vpop.f32.mrb[10].mxu0 }
 0x1b6   :  { %v1280_v59 = vmax.f32 %v1018_v2, 0.0  ;;  %v235_v48 = vpop.permute.xlu1 %234  ;;  %v4037_v5 = vpop.f32.mrb[11].mxu0 }
 0x1b7   :  { %vm303_vm9 = vcmp.eq.s32.totalorder %v3613_v4, %v235_v48 }
 0x1b8   :  { %v1335_v45 = vmul.f32 %v4008_v44, %v1280_v59  ;;  %vm543_vm12 = vmor %vm303_vm9, %vm495_vm11  ;;  %vm297_vm9 = vcmp.eq.s32.totalorder %v3613_v4, %v217_v50 }
 0x1b9   :  { %v4042_v21 = vpop.f32.mrb[12].mxu0  ;;  %2902 = vset.pattern.permute.xlu1 %v3121_v3 }
 0x1ba   :  { %1388 = vadd.xlane.f32.xlu0 %v1335_v45  ;;  %v4045_v7 = vpop.f32.mrb[13].mxu0  ;;  %v1281_v19 = vmax.f32 %v4042_v21, 0.0 }
 0x1bb   :  { %v643_v9 = vpop.permute.xlu1 %642 }
 0x1bc   :  { %vm727_vm8 = vcmp.eq.s32.totalorder %v3613_v4, %v643_v9  ;;  %v1336_v53 = vmul.f32 %v4008_v44, %v1281_v19 }
 0x1bd   :  { %vm775_vm10 = vmor %vm535_vm7, %vm727_vm8  ;;  %v1030_v49 = vpop.f32.mrb[14].mxu0 }
 0x1be   :  { %v1282_v16 = vmax.f32 %v1030_v49, 0.0  ;;  %v4049_v1 = vpop.f32.mrb[15].mxu0  ;;  %2463 = vmatmul.mubr.msk.f32.gmra.mrb[58].mxu0 %vm775_vm10, %v4556_v6 }
 0x1bf   :  { %v667_v3 = vpop.permute.xlu1 %666  ;;  %1166 = vmatprep.mubr.f32.mxu0 %v4554_v15 }
 0x1c0   :  { %v1337_v13 = vmul.f32 %v4008_v44, %v1282_v16  ;;  %vm735_vm13 = vcmp.eq.s32.totalorder %v3613_v4, %v667_v3 }
 0x1c1   :  { %vm783_vm14 = vmor %vm543_vm12, %vm735_vm13  ;;  %v4057_v24 = vpop.f32.mrb[16].mxu0 }
 0x1c2   :  { %1392 = vadd.xlane.f32.xlu0 %v1337_v13  ;;  %v4059_v52 = vpop.f32.mrb[17].mxu0  ;;  %2471 = vmatmul.mubr.msk.f32.gmra.mrb[8].mxu1 %vm783_vm14, %v4556_v6  ;;  %v1283_v54 = vmax.f32 %v4057_v24, 0.0  ;;  %v220_v24 = vpop.permute.xlu0 %219 }
 0x1c3   :  { %1214 = vmatprep.mubr.f32.mxu1 %v4554_v15 }
 0x1c4   :  { %v406_v60 = vpop.permute.xlu1 %405  ;;  %v1338_v20 = vmul.f32 %v4008_v44, %v1283_v54 }
 0x1c5   :  { %v1042_v41 = vpop.f32.mrb[18].mxu0  ;;  %vm488_vm15 = vcmp.eq.s32.totalorder %v3613_v4, %v406_v60 }
 0x1c6   :  { %v1284_v0 = vmax.f32 %v1042_v41, 0.0  ;;  %v4063_v62 = vpop.f32.mrb[19].mxu0  ;;  %vm536_vm1 = vmor %vm296_vm0, %vm488_vm15  ;;  %vm497_vm15 = vcmp.eq.s32.totalorder %v3613_v4, %v3877_v63 }
 0x1c8   :  { %v1339_v17 = vmul.f32 %v4008_v44, %v1284_v0 }
 0x1c9   :  { %v238_v23 = vpop.permute.xlu1 %237  ;;  %v4066_v27 = vpop.f32.mrb[20].mxu0 }
 0x1ca   :  { %1396 = vadd.xlane.f32.xlu0 %v1339_v17  ;;  %v4068_v55 = vpop.f32.mrb[21].mxu0  ;;  %vm304_vm3 = vcmp.eq.s32.totalorder %v3613_v4, %v238_v23  ;;  %v1285_v2 = vmax.f32 %v4066_v27, 0.0 }
 0x1cb   :  { %vm544_vm6 = vmor %vm304_vm3, %vm496_vm5 }
 0x1cc   :  { %v1340_v48 = vmul.f32 %v4008_v44, %v1285_v2 }
 0x1cd   :  { %v1054_v29 = vpop.f32.mrb[22].mxu0 }
 0x1ce   :  { %v1286_v25 = vmax.f32 %v1054_v29, 0.0  ;;  %v646_v28 = vpop.permute.xlu1 %645  ;;  %v4072_v18 = vpop.f32.mrb[23].mxu0 }
 0x1cf   :  { %vm728_vm2 = vcmp.eq.s32.totalorder %v3613_v4, %v646_v28  ;;  %v247_v29 = vpop.permute.xlu0 %246 }
 0x1d0   :  { %v1341_v14 = vmul.f32 %v4008_v44, %v1286_v25  ;;  %vm776_vm4 = vmor %vm536_vm1, %vm728_vm2 }
 0x1d1   :  { %v4077_v32 = vpop.f32.mrb[24].mxu0  ;;  %2464 = vmatmul.mubr.msk.f32.gmra.mrb[60].mxu0 %vm776_vm4, %v4556_v6  ;;  %vm298_vm4 = vcmp.eq.s32.totalorder %v3613_v4, %v220_v24 }
 0x1d2   :  { %v670_v8 = vpop.permute.xlu1 %669  ;;  %1400 = vadd.xlane.f32.xlu0 %v1341_v14  ;;  %v4082_v30 = vpop.f32.mrb[25].mxu0  ;;  %1172 = vmatprep.mubr.f32.mxu0 %v4554_v15  ;;  %v1287_v49 = vmax.f32 %v4077_v32, 0.0 }
 0x1d3   :  { %vm736_vm7 = vcmp.eq.s32.totalorder %v3613_v4, %v670_v8  ;;  %v250_v14 = vpop.permute.xlu0 %249 }
 0x1d4   :  { %vm784_vm8 = vmor %vm544_vm6, %vm736_vm7  ;;  %v1342_v13 = vmul.f32 %v4008_v44, %v1287_v49 }
 0x1d5   :  { %v4087_v22 = vpop.f32.mrb[26].mxu0  ;;  %2472 = vmatmul.mubr.msk.f32.gmra.mrb[10].mxu1 %vm784_vm8, %v4556_v6 }
 0x1d6   :  { %v4090_v35 = vpop.f32.mrb[27].mxu0  ;;  %1220 = vmatprep.mubr.f32.mxu1 %v4554_v15  ;;  %v1288_v23 = vmax.f32 %v4087_v22, 0.0 }
 0x1d7   :  { %v409_v31 = vpop.permute.xlu1 %408  ;;  %v682_v36 = vpop.permute.xlu0 %681 }
 0x1d8   :  { %vm489_vm10 = vcmp.eq.s32.totalorder %v3613_v4, %v409_v31  ;;  %v1343_v25 = vmul.f32 %v4008_v44, %v1288_v23 }
 0x1d9   :  { %1378 = vadd.xlane.f32.xlu1 %v1330_v58  ;;  %vm537_vm11 = vmor %vm297_vm9, %vm489_vm10  ;;  %vm498_vm9 = vcmp.eq.s32.totalorder %v3613_v4, %v3886_v46 }
 0x1dc   :  { %v241_v39 = vpop.permute.xlu1 %240  ;;  %v4097_v10 = vpop.f32.mrb[28].mxu0 }
 0x1dd   :  { %1382 = vadd.xlane.f32.xlu1 %v1332_v38  ;;  %v4099_v47 = vpop.f32.mrb[29].mxu0  ;;  %vm305_vm13 = vcmp.eq.s32.totalorder %v3613_v4, %v241_v39  ;;  %v1289_v33 = vmax.f32 %v4097_v10, 0.0 }
 0x1de   :  { %vm545_vm0 = vmor %vm305_vm13, %vm497_vm15 }
 0x1df   :  { %v1344_v31 = vmul.f32 %v4008_v44, %v1289_v33 }
 0x1e1   :  { %v649_v40 = vpop.permute.xlu1 %648  ;;  %1386 = vadd.xlane.f32.xlu1 %v1334_v51 }
 0x1e2   :  { %vm729_vm12 = vcmp.eq.s32.totalorder %v3613_v4, %v649_v40  ;;  %v685_v40 = vpop.permute.xlu0 %684 }
 0x1e3   :  { %vm777_vm14 = vmor %vm537_vm11, %vm729_vm12 }
 0x1e4   :  { %2465 = vmatmul.mubr.msk.f32.gmra.mrb[62].mxu0 %vm777_vm14, %v4556_v6  ;;  %vm307_vm14 = vcmp.eq.s32.totalorder %v3613_v4, %v247_v29 }
 0x1e5   :  { %v673_v11 = vpop.permute.xlu1 %672  ;;  %1390 = vadd.xlane.f32.xlu1 %v1336_v53  ;;  %1178 = vmatprep.mubr.f32.mxu0 %v4554_v15 }
 0x1e6   :  { %vm737_vm1 = vcmp.eq.s32.totalorder %v3613_v4, %v673_v11  ;;  %v4114_v57 = vpop.f32.mrb[30].mxu0 }
 0x1e7   :  { %vm785_vm2 = vmor %vm545_vm0, %vm737_vm1  ;;  %v4118_v59 = vpop.f32.mrb[31].mxu0  ;;  %v1290_v50 = vmax.f32 %v4114_v57, 0.0 }
 0x1e8   :  { %2473 = vmatmul.mubr.msk.f32.gmra.mrb[12].mxu1 %vm785_vm2, %v4556_v6  ;;  %vm740_vm2 = vcmp.eq.s32.totalorder %v3613_v4, %v682_v36 }
 0x1e9   :  { %1394 = vadd.xlane.f32.xlu1 %v1338_v20  ;;  %1226 = vmatprep.mubr.f32.mxu1 %v4554_v15  ;;  %v1345_v53 = vmul.f32 %v4008_v44, %v1290_v50 }
 0x1ea   :  { %v244_v63 = vpop.permute.xlu1 %243 }
 0x1eb   :  { %vm306_vm7 = vcmp.eq.s32.totalorder %v3613_v4, %v244_v63 }
 0x1ec   :  { %v1084_v45 = vpop.f32.mrb[32].mxu0  ;;  %vm546_vm10 = vmor %vm306_vm7, %vm498_vm9  ;;  %vm741_vm7 = vcmp.eq.s32.totalorder %v3613_v4, %v685_v40 }
 0x1ed   :  { %v1291_v21 = vmax.f32 %v1084_v45, 0.0  ;;  %1398 = vadd.xlane.f32.xlu1 %v1340_v48  ;;  %v4123_v9 = vpop.f32.mrb[33].mxu0  ;;  %v448_v48 = vpop.permute.xlu0 %447 }
 0x1ef   :  { %v1346_v16 = vmul.f32 %v4008_v44, %v1291_v21  ;;  %v412_v3 = vpop.permute.xlu1 %411 }
 0x1f0   :  { %vm490_vm3 = vcmp.eq.s32.totalorder %v3613_v4, %v412_v3 }
 0x1f1   :  { %1410 = vadd.xlane.f32.xlu1 %v1346_v16  ;;  %vm538_vm5 = vmor %vm298_vm4, %vm490_vm3  ;;  %vm308_vm3 = vcmp.eq.s32.totalorder %v3613_v4, %v250_v14  ;;  %v451_v24 = vpop.permute.xlu0 %450 }
 0x1f4   :  { %v652_v60 = vpop.permute.xlu1 %651 }
 0x1f5   :  { %vm730_vm6 = vcmp.eq.s32.totalorder %v3613_v4, %v652_v60  ;;  %1402 = vadd.xlane.f32.xlu1 %v1342_v13 }
 0x1f6   :  { %vm778_vm8 = vmor %vm538_vm5, %vm730_vm6  ;;  %v1090_v41 = vpop.f32.mrb[34].mxu0 }
 0x1f7   :  { %v1292_v0 = vmax.f32 %v1090_v41, 0.0  ;;  %v4132_v26 = vpop.f32.mrb[35].mxu0  ;;  %2466 = vmatmul.mubr.msk.f32.gmra.mrb[64].mxu0 %vm778_vm8, %v4556_v6 }
 0x1f8   :  { %v676_v17 = vpop.permute.xlu1 %675 }
 0x1f9   :  { %v1347_v27 = vmul.f32 %v4008_v44, %v1292_v0  ;;  %vm738_vm11 = vcmp.eq.s32.totalorder %v3613_v4, %v676_v17  ;;  %v262_v17 = vpop.permute.xlu0 %261 }
 0x1fa   :  { %vm786_vm12 = vmor %vm546_vm10, %vm738_vm11 }
 0x1fb   :  { %1412 = vadd.xlane.f32.xlu0 %v1347_v27  ;;  %2474 = vmatmul.mubr.msk.f32.gmra.mrb[14].mxu1 %vm786_vm12, %v4556_v6 }
 0x1fc   :  { %1232 = vmatprep.mubr.f32.mxu1 %v4554_v15 }
 0x1fd   :  { %v439_v28 = vpop.permute.xlu1 %438 }
 0x1fe   :  { %vm499_vm13 = vcmp.eq.s32.totalorder %v3613_v4, %v439_v28 }
 0x1ff   :  { %1404 = vadd.xlane.f32.xlu0 %v1343_v25  ;;  %v1096_v46 = vpop.f32.mrb[36].mxu0  ;;  %vm547_vm15 = vmor %vm307_vm14, %vm499_vm13  ;;  %vm502_vm13 = vcmp.eq.s32.totalorder %v3613_v4, %v448_v48  ;;  %v265_v25 = vpop.permute.xlu0 %264 }
 0x200   :  { %v1293_v32 = vmax.f32 %v1096_v46, 0.0  ;;  %v4144_v8 = vpop.f32.mrb[37].mxu0 }
 0x202   :  { %v1348_v22 = vmul.f32 %v4008_v44, %v1293_v32  ;;  %v679_v58 = vpop.permute.xlu1 %678 }
 0x203   :  { %vm739_vm0 = vcmp.eq.s32.totalorder %v3613_v4, %v679_v58  ;;  %v697_v46 = vpop.permute.xlu0 %696 }
 0x204   :  { %vm787_vm1 = vmor %vm547_vm15, %vm739_vm0  ;;  %1414 = vadd.xlane.f32.xlu1 %v1348_v22 }
 0x205   :  { %2475 = vmatmul.mubr.msk.f32.gmra.mrb[16].mxu1 %vm787_vm1, %v4556_v6 }
 0x206   :  { %1238 = vmatprep.mubr.f32.mxu1 %v4554_v15 }
 0x207   :  { %v442_v38 = vpop.permute.xlu1 %441 }
 0x208   :  { %vm500_vm4 = vcmp.eq.s32.totalorder %v3613_v4, %v442_v38  ;;  %1406 = vadd.xlane.f32.xlu1 %v1344_v31 }
 0x209   :  { %vm548_vm5 = vmor %vm308_vm3, %vm500_vm4  ;;  %v1102_v34 = vpop.f32.mrb[38].mxu0 }
 0x20a   :  { %vm788_vm6 = vmor %vm548_vm5, %vm740_vm2  ;;  %v1294_v39 = vmax.f32 %v1102_v34, 0.0  ;;  %v4156_v10 = vpop.f32.mrb[39].mxu0  ;;  %vm503_vm2 = vcmp.eq.s32.totalorder %v3613_v4, %v451_v24 }
 0x20b   :  { %2476 = vmatmul.mubr.msk.f32.gmra.mrb[18].mxu1 %vm788_vm6, %v4556_v6 }
 0x20c   :  { %v1349_v51 = vmul.f32 %v4008_v44, %v1294_v39  ;;  %v253_v19 = vpop.permute.xlu1 %252  ;;  %1244 = vmatprep.mubr.f32.mxu1 %v4554_v15 }
 0x20d   :  { %vm309_vm8 = vcmp.eq.s32.totalorder %v3613_v4, %v253_v19 }
 0x20e   :  { %1416 = vadd.xlane.f32.xlu0 %v1349_v51 }
 0x211   :  { %v445_v54 = vpop.permute.xlu1 %444 }
 0x212   :  { %vm501_vm9 = vcmp.eq.s32.totalorder %v3613_v4, %v445_v54  ;;  %1408 = vadd.xlane.f32.xlu0 %v1345_v53 }
 0x213   :  { %vm549_vm10 = vmor %vm309_vm8, %vm501_vm9  ;;  %v1108_v11 = vpop.f32.mrb[40].mxu0 }
 0x214   :  { %vm789_vm11 = vmor %vm549_vm10, %vm741_vm7  ;;  %v1295_v57 = vmax.f32 %v1108_v11, 0.0  ;;  %v4166_v20 = vpop.f32.mrb[41].mxu0  ;;  %vm312_vm7 = vcmp.eq.s32.totalorder %v3613_v4, %v262_v17 }
 0x215   :  { %2477 = vmatmul.mubr.msk.f32.gmra.mrb[20].mxu1 %vm789_vm11, %v4556_v6  ;;  %vm745_vm11 = vcmp.eq.s32.totalorder %v3613_v4, %v697_v46 }
 0x216   :  { %v1350_v2 = vmul.f32 %v4008_v44, %v1295_v57  ;;  %v256_v63 = vpop.permute.xlu1 %255  ;;  %1250 = vmatprep.mubr.f32.mxu1 %v4554_v15 }
 0x217   :  { %vm310_vm12 = vcmp.eq.s32.totalorder %v3613_v4, %v256_v63 }
 0x218   :  { %1418 = vadd.xlane.f32.xlu1 %v1350_v2  ;;  %vm550_vm14 = vmor %vm310_vm12, %vm502_vm13  ;;  %vm313_vm12 = vcmp.eq.s32.totalorder %v3613_v4, %v265_v25 }
 0x219   :  { %v1114_v45 = vpop.f32.mrb[42].mxu0 }
 0x21a   :  { %v1296_v21 = vmax.f32 %v1114_v45, 0.0  ;;  %v4173_v49 = vpop.f32.mrb[43].mxu0 }
 0x21b   :  { %v688_v16 = vpop.permute.xlu1 %687 }
 0x21c   :  { %v1351_v3 = vmul.f32 %v4008_v44, %v1296_v21  ;;  %vm742_vm15 = vcmp.eq.s32.totalorder %v3613_v4, %v688_v16 }
 0x21d   :  { %vm790_vm0 = vmor %vm550_vm14, %vm742_vm15 }
 0x21e   :  { %1420 = vadd.xlane.f32.xlu0 %v1351_v3  ;;  %2478 = vmatmul.mubr.msk.f32.gmra.mrb[22].mxu1 %vm790_vm0, %v4556_v6 }
 0x21f   :  { %1256 = vmatprep.mubr.f32.mxu1 %v4554_v15 }
 0x220   :  { %v259_v13 = vpop.permute.xlu1 %258 }
 0x221   :  { %vm311_vm1 = vcmp.eq.s32.totalorder %v3613_v4, %v259_v13 }
 0x222   :  { %vm551_vm3 = vmor %vm311_vm1, %vm503_vm2 }
 0x223   :  { %v1120_v60 = vpop.f32.mrb[44].mxu0 }
 0x224   :  { %v4180_v41 = vpop.f32.mrb[45].mxu0  ;;  %v1297_v57 = vmax.f32 %v1120_v60, 0.0 }
 0x225   :  { %v691_v0 = vpop.permute.xlu1 %690 }
 0x226   :  { %vm743_vm4 = vcmp.eq.s32.totalorder %v3613_v4, %v691_v0  ;;  %v1352_v63 = vmul.f32 %v4008_v44, %v1297_v57 }
 0x227   :  { %vm791_vm5 = vmor %vm551_vm3, %vm743_vm4  ;;  %vm3126_vm3 = vmmov 0  }
 0x228   :  { %2479 = vmatmul.mubr.msk.f32.gmra.mrb[24].mxu1 %vm791_vm5, %v4556_v6 }
 0x229   :  { %1262 = vmatprep.mubr.f32.mxu1 %v4554_v15 }
 0x22a   :  { %v454_v23 = vpop.permute.xlu1 %453 }
 0x22b   :  { %vm504_vm6 = vcmp.eq.s32.totalorder %v3613_v4, %v454_v23 }
 0x22c   :  { %v1126_v27 = vpop.f32.mrb[46].mxu0  ;;  %vm552_vm8 = vmor %vm312_vm7, %vm504_vm6 }
 0x22d   :  { %v4188_v29 = vpop.f32.mrb[47].mxu0  ;;  %v1298_v34 = vmax.f32 %v1126_v27, 0.0 }
 0x22f   :  { %v694_v28 = vpop.permute.xlu1 %693 }
 0x230   :  { %vm744_vm9 = vcmp.eq.s32.totalorder %v3613_v4, %v694_v28 }
 0x231   :  { %vm792_vm10 = vmor %vm552_vm8, %vm744_vm9 }
 0x232   :  { %2480 = vmatmul.mubr.msk.f32.gmra.mrb[26].mxu1 %vm792_vm10, %v4556_v6 }
 0x233   :  { %1268 = vmatprep.mubr.f32.mxu1 %v4554_v15 }
 0x234   :  { %v457_v14 = vpop.permute.xlu1 %456 }
 0x235   :  { %vm505_vm13 = vcmp.eq.s32.totalorder %v3613_v4, %v457_v14  ;;  %v1353_v4 = vmul.f32 %v4008_v44, %v1298_v34 }
 0x236   :  { %vm553_vm14 = vmor %vm313_vm12, %vm505_vm13  ;;  %v1132_v32 = vpop.f32.mrb[48].mxu0 }
 0x237   :  { %v4196_v33 = vpop.f32.mrb[49].mxu0  ;;  %vm793_vm15 = vmor %vm553_vm14, %vm745_vm11  ;;  %v1299_v48 = vmax.f32 %v1132_v32, 0.0 }
 0x238   :  { %2481 = vmatmul.mubr.msk.f32.gmra.mrb[28].mxu1 %vm793_vm15, %v4556_v6  ;;  %v4265_v6 = vld [vmem:[#allocation3] ss:$0 sm:$0xff] }
 0x239   :  { %v1354_v45 = vmul.f32 %v4008_v44, %v1299_v48 }
 0x245   :  { %v1138_v22 = vpop.f32.mrb[50].mxu0 }
 0x246   :  { %v4199_v58 = vpop.f32.mrb[51].mxu0  ;;  %v1300_v50 = vmax.f32 %v1138_v22, 0.0 }
 0x248   :  { %v1355_v51 = vmul.f32 %v4008_v44, %v1300_v50 }
 0x249   :  { %v1186_v36 = vpop.f32.mrb[0].mxu1 }
 0x24a   :  { %v1308_v31 = vmax.f32 %v1186_v36, 0.0  ;;  %v4201_v38 = vpop.f32.mrb[1].mxu1 }
 0x24c   :  { %v1363_v39 = vmul.f32 %v4008_v44, %v1308_v31 }
 0x24e   :  { %1444 = vadd.xlane.f32.xlu0 %v1363_v39 }
 0x252   :  { %1424 = vadd.xlane.f32.xlu0 %v1353_v4 }
 0x256   :  { %1428 = vadd.xlane.f32.xlu0 %v1355_v51 }
 0x258   :  { %v1144_v19 = vpop.f32.mrb[52].mxu0 }
 0x259   :  { %v4206_v40 = vpop.f32.mrb[53].mxu0  ;;  %v1301_v21 = vmax.f32 %v1144_v19, 0.0 }
 0x25b   :  { %v1356_v16 = vmul.f32 %v4008_v44, %v1301_v21 }
 0x25c   :  { %v1192_v53 = vpop.f32.mrb[2].mxu1 }
 0x25d   :  { %v1309_v54 = vmax.f32 %v1192_v53, 0.0  ;;  %v4208_v11 = vpop.f32.mrb[3].mxu1 }
 0x25e   :  { %4559 = vst [vmem:[#allocation7_spill] sm:$0xff] %v4208_v11 }
 0x25f   :  { %v1364_v2 = vmul.f32 %v4008_v44, %v1309_v54 }
 0x261   :  { %1446 = vadd.xlane.f32.xlu1 %v1364_v2 }
 0x265   :  { %1422 = vadd.xlane.f32.xlu1 %v1352_v63 }
 0x269   :  { %1426 = vadd.xlane.f32.xlu1 %v1354_v45 }
 0x26b   :  { %v1150_v3 = vpop.f32.mrb[54].mxu0 }
 0x26c   :  { %v1302_v13 = vmax.f32 %v1150_v3, 0.0  ;;  %v4214_v24 = vpop.f32.mrb[55].mxu0 }
 0x26d   :  { %1430 = vadd.xlane.f32.xlu1 %v1356_v16 }
 0x26e   :  { %v1357_v60 = vmul.f32 %v4008_v44, %v1302_v13 }
 0x26f   :  { %v1198_v0 = vpop.f32.mrb[4].mxu1 }
 0x270   :  { %v4217_v17 = vpop.f32.mrb[5].mxu1  ;;  %1432 = vadd.xlane.f32.xlu0 %v1357_v60  ;;  %v1310_v3 = vmax.f32 %v1198_v0, 0.0 }
 0x271   :  { %4560 = vst [vmem:[#allocation8_spill] sm:$0xff] %v4217_v17 }
 0x27e   :  { %v1156_v23 = vpop.f32.mrb[56].mxu0 }
 0x27f   :  { %v1303_v27 = vmax.f32 %v1156_v23, 0.0  ;;  %v4219_v25 = vpop.f32.mrb[57].mxu0 }
 0x281   :  { %v1358_v28 = vmul.f32 %v4008_v44, %v1303_v27  ;;  %v1365_v27 = vmul.f32 %v4008_v44, %v1310_v3 }
 0x282   :  { %v1204_v46 = vpop.f32.mrb[6].mxu1 }
 0x283   :  { %v4222_v14 = vpop.f32.mrb[7].mxu1  ;;  %1434 = vadd.xlane.f32.xlu1 %v1358_v28  ;;  %v1311_v19 = vmax.f32 %v1204_v46, 0.0 }
 0x284   :  { %4561 = vst [vmem:[#allocation9_spill] sm:$0xff] %v4222_v14 }
 0x285   :  { %v1366_v2 = vmul.f32 %v4008_v44, %v1311_v19 }
 0x291   :  { %v1162_v32 = vpop.f32.mrb[58].mxu0 }
 0x292   :  { %v1304_v22 = vmax.f32 %v1162_v32, 0.0  ;;  %v4224_v36 = vpop.f32.mrb[59].mxu0 }
 0x294   :  { %v1359_v31 = vmul.f32 %v4008_v44, %v1304_v22 }
 0x295   :  { %v1210_v34 = vpop.f32.mrb[8].mxu1 }
 0x296   :  { %v4227_v39 = vpop.f32.mrb[9].mxu1  ;;  %1436 = vadd.xlane.f32.xlu0 %v1359_v31  ;;  %v1312_v28 = vmax.f32 %v1210_v34, 0.0 }
 0x297   :  { %4562 = vst [vmem:[#allocation10_spill] sm:$0xff] %v4227_v39 }
 0x298   :  { %v1367_v46 = vmul.f32 %v4008_v44, %v1312_v28 }
 0x2a4   :  { %v1168_v4 = vpop.f32.mrb[60].mxu0 }
 0x2a5   :  { %v1305_v50 = vmax.f32 %v1168_v4, 0.0  ;;  %v4229_v51 = vpop.f32.mrb[61].mxu0 }
 0x2a7   :  { %v1360_v53 = vmul.f32 %v4008_v44, %v1305_v50 }
 0x2a8   :  { %v1216_v54 = vpop.f32.mrb[10].mxu1 }
 0x2a9   :  { %v4232_v57 = vpop.f32.mrb[11].mxu1  ;;  %1438 = vadd.xlane.f32.xlu1 %v1360_v53  ;;  %v1313_v63 = vmax.f32 %v1216_v54, 0.0  ;;  %v1379_v53 = vpop.xlane.xlu1 %1378 }
 0x2aa   :  { %4563 = vst [vmem:[#allocation11_spill] sm:$0xff] %v4232_v57  ;;  %v1481_v61 = vadd.f32 %v4265_v6, %v1379_v53 }
 0x2ab   :  { %v1368_v48 = vmul.f32 %v4008_v44, %v1313_v63 }
 0x2ad   :  { %1450 = vadd.xlane.f32.xlu1 %v1366_v2  ;;  %v1383_v34 = vpop.xlane.xlu1 %1382 }
 0x2b1   :  { %1454 = vadd.xlane.f32.xlu1 %v1368_v48 }
 0x2b7   :  { %v1174_v45 = vpop.f32.mrb[62].mxu0 }
 0x2b8   :  { %v1306_v21 = vmax.f32 %v1174_v45, 0.0  ;;  %v4236_v16 = vpop.f32.mrb[63].mxu0 }
 0x2ba   :  { %v1361_v13 = vmul.f32 %v4008_v44, %v1306_v21  ;;  %v1387_v21 = vpop.xlane.xlu1 %1386 }
 0x2bb   :  { %v1222_v60 = vpop.f32.mrb[12].mxu1 }
 0x2bc   :  { %v4239_v23 = vpop.f32.mrb[13].mxu1  ;;  %1440 = vadd.xlane.f32.xlu0 %v1361_v13  ;;  %v1314_v32 = vmax.f32 %v1222_v60, 0.0 }
 0x2bd   :  { %4564 = vst [vmem:[#allocation12_spill] sm:$0xff] %v4239_v23 }
 0x2be   :  { %v1369_v22 = vmul.f32 %v4008_v44, %v1314_v32  ;;  %v1391_v28 = vpop.xlane.xlu1 %1390 }
 0x2c0   :  { %1448 = vadd.xlane.f32.xlu0 %v1365_v27 }
 0x2c4   :  { %1452 = vadd.xlane.f32.xlu0 %v1367_v46  ;;  %v1395_v46 = vpop.xlane.xlu1 %1394 }
 0x2c8   :  { %1456 = vadd.xlane.f32.xlu0 %v1369_v22 }
 0x2ca   :  { %v1180_v31 = vpop.f32.mrb[64].mxu0 }
 0x2cb   :  { %v4244_v4 = vpop.f32.mrb[65].mxu0 }
 0x2ce   :  { %v1228_v0 = vpop.f32.mrb[14].mxu1 }
 0x2cf   :  { %v1315_v50 = vmax.f32 %v1228_v0, 0.0  ;;  %v4246_v19 = vpop.f32.mrb[15].mxu1 }
 0x2d0   :  { %4565 = vst [vmem:[#allocation13_spill] sm:$0xff] %v4246_v19 }
 0x2d1   :  { %v1370_v54 = vmul.f32 %v4008_v44, %v1315_v50 }
 0x2d3   :  { %1458 = vadd.xlane.f32.xlu1 %v1370_v54  ;;  %v4258_v54 = vpop.xlane.xlu1 %1398 }
 0x2d7   :  { %v4262_v15 = vpop.xlane.xlu1 %1410 }
 0x2d8   :  { %v1234_v2 = vpop.f32.mrb[16].mxu1 }
 0x2d9   :  { %v1316_v63 = vmax.f32 %v1234_v2, 0.0  ;;  %v4249_v48 = vpop.f32.mrb[17].mxu1 }
 0x2da   :  { %4566 = vst [vmem:[#allocation14_spill] sm:$0xff] %v4249_v48 }
 0x2db   :  { %v1371_v45 = vmul.f32 %v4008_v44, %v1316_v63  ;;  %v1381_v63 = vpop.xlane.xlu0 %1380 }
 0x2dd   :  { %1460 = vadd.xlane.f32.xlu0 %v1371_v45 }
 0x2de   :  { %v1240_v3 = vpop.f32.mrb[18].mxu1 }
 0x2df   :  { %v1317_v13 = vmax.f32 %v1240_v3, 0.0  ;;  %v4252_v60 = vpop.f32.mrb[19].mxu1 }
 0x2e0   :  { %4567 = vst [vmem:[#allocation15_spill] sm:$0xff] %v4252_v60  ;;  %v2484_v60 = vmul.f32 -1.442695, %v1481_v61  ;;  %v1483_v61 = vadd.f32 %v4265_v6, %v1383_v34 }
 0x2e1   :  { %v1372_v27 = vmul.f32 %v4008_v44, %v1317_v13  ;;  %v1307_v13 = vmax.f32 %v1180_v31, 0.0 }
 0x2e2   :  { %2904 = vpow2.f32 %v2484_v60  ;;  %v2486_v23 = vmul.f32 -1.442695, %v1483_v61 }
 0x2e3   :  { %1462 = vadd.xlane.f32.xlu1 %v1372_v27 }
 0x2e8   :  { %v1246_v32 = vpop.f32.mrb[20].mxu1 }
 0x2e9   :  { %v1318_v22 = vmax.f32 %v1246_v32, 0.0  ;;  %v4255_v0 = vpop.f32.mrb[21].mxu1  ;;  %v1385_v32 = vpop.xlane.xlu0 %1384 }
 0x2ea   :  { %4568 = vst [vmem:[#allocation16_spill] sm:$0xff] %v4255_v0  ;;  %v4269_v0 = vpop.xlane.xlu1 %1402  ;;  %v1484_v31 = vadd.f32 %v4265_v6, %v1385_v32 }
 0x2eb   :  { %v1373_v50 = vmul.f32 %v4008_v44, %v1318_v22  ;;  %v1362_v22 = vmul.f32 %v4008_v44, %v1307_v13 }
 0x2ec   :  { %v2905_v34 = vpop.eup %2904 }
 0x2ed   :  { %1464 = vadd.xlane.f32.xlu0 %v1373_v50  ;;  %v1389_v50 = vpop.xlane.xlu0 %1388 }
 0x2ee   :  { %v4275_v57 = vpop.xlane.xlu1 %1414  ;;  %v1486_v32 = vadd.f32 %v4265_v6, %v1389_v50 }
 0x2f1   :  { %v1252_v2 = vpop.f32.mrb[22].mxu1  ;;  %v1393_v48 = vpop.xlane.xlu0 %1392 }
 0x2f2   :  { %v1319_v45 = vmax.f32 %v1252_v2, 0.0  ;;  %v4260_v3 = vpop.f32.mrb[23].mxu1  ;;  %v1482_v2 = vadd.f32 %v4265_v6, %v1381_v63 }
 0x2f3   :  { %4569 = vst [vmem:[#allocation17_spill] sm:$0xff] %v4260_v3 }
 0x2f4   :  { %v1374_v27 = vmul.f32 %v4008_v44, %v1319_v45  ;;  %v2485_v13 = vmul.f32 -1.442695, %v1482_v2 }
 0x2f5   :  { %v1397_v63 = vpop.xlane.xlu0 %1396 }
 0x2f6   :  { %1466 = vadd.xlane.f32.xlu1 %v1374_v27  ;;  %v2487_v27 = vmul.f32 -1.442695, %v1484_v31  ;;  %2906 = vpow2.f32 %v2485_v13  ;;  %v2489_v13 = vmul.f32 -1.442695, %v1486_v32 }
 0x2f8   :  { %2908 = vpow2.f32 %v2487_v27  ;;  %v1488_v27 = vadd.f32 %v4265_v6, %v1393_v48 }
 0x2f9   :  { %v1401_v14 = vpop.xlane.xlu0 %1400  ;;  %2910 = vpow2.f32 %v2486_v23 }
 0x2fa   :  { %1442 = vadd.xlane.f32.xlu1 %v1362_v22  ;;  %v1485_v22 = vadd.f32 %v4265_v6, %v1387_v21  ;;  %v1489_v21 = vadd.f32 %v4265_v6, %v1395_v46 }
 0x2fb   :  { %v1258_v3 = vpop.f32.mrb[24].mxu1 }
 0x2fc   :  { %v1320_v19 = vmax.f32 %v1258_v3, 0.0  ;;  %v4273_v45 = vpop.f32.mrb[25].mxu1  ;;  %v4280_v3 = vpop.xlane.xlu1 %1406  ;;  %v2488_v60 = vmul.f32 -1.442695, %v1485_v22  ;;  %v1673_v22 = vadd.f32 1.0, %v2905_v34 }
 0x2fd   :  { %4570 = vst [vmem:[#allocation18_spill] sm:$0xff] %v4273_v45  ;;  %v1413_v50 = vpop.xlane.xlu0 %1412 }
 0x2fe   :  { %v1375_v53 = vmul.f32 %v4008_v44, %v1320_v19  ;;  %v1487_v19 = vadd.f32 %v4265_v6, %v1391_v28  ;;  %2912 = vpow2.f32 %v2488_v60  ;;  %v1498_v32 = vadd.f32 %v4265_v6, %v1413_v50 }
 0x2ff   :  { %2914 = vpow2.f32 %v2489_v13 }
 0x300   :  { %1468 = vadd.xlane.f32.xlu0 %v1375_v53  ;;  %v4287_v31 = vpop.xlane.xlu1 %1418  ;;  %v2490_v61 = vmul.f32 -1.442695, %v1487_v19  ;;  %v2907_v46 = vpop.eup %2906  ;;  %v2491_v19 = vmul.f32 -1.442695, %v1488_v27  ;;  %v2501_v13 = vmul.f32 -1.442695, %v1498_v32  ;;  %v1493_v27 = vadd.f32 %v4265_v6, %v4269_v0 }
 0x301   :  { %v1674_v48 = vadd.f32 1.0, %v2907_v46  ;;  %v1405_v34 = vpop.xlane.xlu0 %1404 }
 0x302   :  { %v2909_v17 = vpop.eup %2908  ;;  %2916 = vpow2.f32 %v2490_v61 }
 0x303   :  { %2918 = vrcp.f32 %v1673_v22 }
 0x304   :  { %v4291_v11 = vpop.xlane.xlu1 %1446 }
 0x305   :  { %v1264_v45 = vpop.f32.mrb[26].mxu1  ;;  %v1417_v22 = vpop.xlane.xlu0 %1416 }
 0x306   :  { %v1321_v2 = vmax.f32 %v1264_v45, 0.0  ;;  %v4284_v39 = vpop.f32.mrb[27].mxu1  ;;  %v2492_v45 = vmul.f32 -1.442695, %v1489_v21  ;;  %v2911_v21 = vpop.eup %2910 }
 0x307   :  { %4571 = vst [vmem:[#allocation19_spill] sm:$0xff] %v4284_v39 }
 0x308   :  { %v1376_v53 = vmul.f32 %v4008_v44, %v1321_v2  ;;  %v1490_v2 = vadd.f32 %v4265_v6, %v1397_v63  ;;  %2920 = vpow2.f32 %v2492_v45  ;;  %v2913_v61 = vpop.eup %2912  ;;  %v1675_v63 = vadd.f32 1.0, %v2911_v21 }
 0x309   :  { %2922 = vpow2.f32 %v2491_v19  ;;  %v4305_v0 = vpop.xlane.xlu0 %1408 }
 0x30a   :  { %1470 = vadd.xlane.f32.xlu1 %v1376_v53  ;;  %v1676_v53 = vadd.f32 1.0, %v2909_v17  ;;  %v2493_v50 = vmul.f32 -1.442695, %v1490_v2  ;;  %2924 = vrcp.f32 %v1674_v48  ;;  %v1492_v17 = vadd.f32 %v4265_v6, %v1401_v14 }
 0x30b   :  { %v1270_v28 = vpop.f32.mrb[28].mxu1  ;;  %v1494_v14 = vadd.f32 %v4265_v6, %v1405_v34 }
 0x30c   :  { %v1322_v23 = vmax.f32 %v1270_v28, 0.0  ;;  %v4293_v39 = vpop.f32.mrb[29].mxu1  ;;  %v1491_v28 = vadd.f32 %v4265_v6, %v4258_v54  ;;  %2926 = vrcp.f32 %v1676_v53  ;;  %v2915_v54 = vpop.eup %2914  ;;  %v2495_v48 = vmul.f32 -1.442695, %v1492_v17 }
 0x30d   :  { %4572 = vst [vmem:[#allocation20_spill] sm:$0xff] %v4293_v39  ;;  %v1423_v39 = vpop.xlane.xlu1 %1422  ;;  %2928 = vpow2.f32 %v2501_v13  ;;  %v2917_v32 = vpop.eup %2916 }
 0x30e   :  { %v1377_v60 = vmul.f32 %v4008_v44, %v1322_v23  ;;  %v1497_v44 = vadd.f32 %v4265_v6, %v4262_v15  ;;  %v2494_v45 = vmul.f32 -1.442695, %v1491_v28  ;;  %v1677_v23 = vadd.f32 1.0, %v2913_v61  ;;  %v2919_v15 = vpop.eup %2918 }
 0x30f   :  { %2930 = vpow2.f32 %v2493_v50  ;;  %v1503_v21 = vadd.f32 %v4265_v6, %v1423_v39  ;;  %v1679_v53 = vadd.f32 1.0, %v2917_v32  ;;  %v1678_v28 = vadd.f32 1.0, %v2915_v54 }
 0x310   :  { %1472 = vadd.xlane.f32.xlu0 %v1377_v60  ;;  %v2500_v46 = vmul.f32 -1.442695, %v1497_v44  ;;  %2932 = vrcp.f32 %v1675_v63  ;;  %v2496_v60 = vmul.f32 -1.442695, %v1493_v27  ;;  %v1499_v50 = vadd.f32 %v4265_v6, %v4275_v57  ;;  %v1421_v63 = vpop.xlane.xlu0 %1420 }
 0x311   :  { %v1427_v19 = vpop.xlane.xlu1 %1426  ;;  %2934 = vpow2.f32 %v2494_v45  ;;  %v2506_v27 = vmul.f32 -1.442695, %v1503_v21  ;;  %v1500_v21 = vadd.f32 %v4265_v6, %v1417_v22 }
 0x312   :  { %v2921_v2 = vpop.eup %2920  ;;  %2936 = vrcp.f32 %v1677_v23  ;;  %v1505_v45 = vadd.f32 %v4265_v6, %v1427_v19  ;;  %v2497_v23 = vmul.f32 -1.442695, %v1494_v14  ;;  %v2502_v32 = vmul.f32 -1.442695, %v1499_v50 }
 0x313   :  { %2938 = vpow2.f32 %v2500_v46  ;;  %v2923_v13 = vpop.eup %2922  ;;  %v1681_v61 = vadd.f32 1.0, %v2921_v2 }
 0x314   :  { %2940 = vpow2.f32 %v2496_v60  ;;  %v2925_v44 = vpop.eup %2924  ;;  %v1680_v54 = vadd.f32 1.0, %v2923_v13  ;;  %v2508_v2 = vmul.f32 -1.442695, %v1505_v45  ;;  %v1501_v45 = vadd.f32 %v4265_v6, %v4287_v31 }
 0x315   :  { %2942 = vpow2.f32 %v2495_v48  ;;  %v1431_v17 = vpop.xlane.xlu1 %1430 }
 0x316   :  { %v2927_v39 = vpop.eup %2926  ;;  %2944 = vrcp.f32 %v1679_v53  ;;  %v1507_v60 = vadd.f32 %v4265_v6, %v1431_v17 }
 0x317   :  { %v2929_v34 = vpop.eup %2928  ;;  %2946 = vrcp.f32 %v1678_v28 }
 0x318   :  { %2948 = vrcp.f32 %v1681_v61  ;;  %v1690_v19 = vadd.f32 1.0, %v2929_v34  ;;  %v2510_v61 = vmul.f32 -1.442695, %v1507_v60  ;;  %v1502_v60 = vadd.f32 %v4265_v6, %v1421_v63 }
 0x319   :  { %v2931_v46 = vpop.eup %2930  ;;  %2950 = vpow2.f32 %v2506_v27  ;;  %v1435_v53 = vpop.xlane.xlu1 %1434  ;;  %v2503_v27 = vmul.f32 -1.442695, %v1500_v21  ;;  %v1495_v21 = vadd.f32 %v4265_v6, %v4280_v3 }
 0x31a   :  { %v2933_v57 = vpop.eup %2932  ;;  %2952 = vpow2.f32 %v2497_v23  ;;  %v1682_v28 = vadd.f32 1.0, %v2931_v46  ;;  %v1509_v17 = vadd.f32 %v4265_v6, %v1435_v53 }
 0x31b   :  { %1819 = vperm.xlu1 %2902, %v2919_v15   ;;  %v4313_v15 = vpop.xlane.xlu0 %1444  ;;  %v2935_v48 = vpop.eup %2934  ;;  %2954 = vrcp.f32 %v1680_v54 }
 0x31c   :  { %v2937_v14 = vpop.eup %2936  ;;  %2956 = vpow2.f32 %v2502_v32 }
 0x31d   :  { %v2939_v13 = vpop.eup %2938  ;;  %2958 = vpow2.f32 %v2508_v2 }
 0x31e   :  { %v2941_v50 = vpop.eup %2940  ;;  %2960 = vrcp.f32 %v1690_v19  ;;  %v1689_v23 = vadd.f32 1.0, %v2939_v13 }
 0x31f   :  { %1824 = vperm.xlu1 %2902, %v2925_v44   ;;  %v1683_v44 = vadd.f32 1.0, %v2935_v48  ;;  %v2943_v22 = vpop.eup %2942  ;;  %2962 = vrcp.f32 %v1682_v28  ;;  %v1425_v34 = vpop.xlane.xlu0 %1424  ;;  %v1685_v46 = vadd.f32 1.0, %v2941_v50  ;;  %v2504_v48 = vmul.f32 -1.442695, %v1501_v45 }
 0x320   :  { %v2945_v54 = vpop.eup %2944  ;;  %2964 = vpow2.f32 %v2510_v61  ;;  %v1684_v31 = vadd.f32 1.0, %v2943_v22  ;;  %v1504_v28 = vadd.f32 %v4265_v6, %v1425_v34 }
 0x321   :  { %v2947_v32 = vpop.eup %2946  ;;  %2966 = vrcp.f32 %v1683_v44 }
 0x322   :  { %v2949_v2 = vpop.eup %2948  ;;  %2968 = vpow2.f32 %v2503_v27  ;;  %v2498_v27 = vmul.f32 -1.442695, %v1495_v21  ;;  %v2507_v3 = vmul.f32 -1.442695, %v1504_v28 }
 0x323   :  { %1829 = vperm.xlu1 %2902, %v2933_v57   ;;  %v2512_v57 = vmul.f32 -1.442695, %v1509_v17  ;;  %v2951_v19 = vpop.eup %2950  ;;  %2970 = vrcp.f32 %v1689_v23  ;;  %v1429_v13 = vpop.xlane.xlu0 %1428 }
 0x324   :  { %2972 = vrcp.f32 %v1685_v46  ;;  %v1695_v61 = vadd.f32 1.0, %v2951_v19  ;;  %v1506_v45 = vadd.f32 %v4265_v6, %v1429_v13 }
 0x325   :  { %2974 = vpow2.f32 %v2512_v57 }
 0x326   :  { %1839 = vperm.xlu0 %2903, %v2937_v14   ;;  %v2505_v14 = vmul.f32 -1.442695, %v1502_v60  ;;  %2976 = vpow2.f32 %v2504_v48  ;;  %v2509_v57 = vmul.f32 -1.442695, %v1506_v45 }
 0x327   :  { %1834 = vperm.xlu1 %2902, %v2927_v39   ;;  %v2953_v39 = vpop.eup %2952  ;;  %2978 = vrcp.f32 %v1684_v31 }
 0x328   :  { %v2955_v53 = vpop.eup %2954  ;;  %v1686_v44 = vadd.f32 1.0, %v2953_v39  ;;  %2980 = vpow2.f32 %v2505_v14 }
 0x329   :  { %v2957_v63 = vpop.eup %2956  ;;  %2982 = vrcp.f32 %v1695_v61 }
 0x32a   :  { %1849 = vperm.xlu0 %2903, %v2945_v54   ;;  %v2959_v50 = vpop.eup %2958  ;;  %v1433_v54 = vpop.xlane.xlu0 %1432  ;;  %2984 = vrcp.f32 %v1686_v44 }
 0x32b   :  { %1844 = vperm.xlu1 %2902, %v2947_v32   ;;  %v2961_v17 = vpop.eup %2960  ;;  %v1697_v34 = vadd.f32 1.0, %v2959_v50  ;;  %v1691_v32 = vadd.f32 1.0, %v2957_v63  ;;  %2986 = vpow2.f32 %v2498_v27  ;;  %v1508_v19 = vadd.f32 %v4265_v6, %v1433_v54 }
 0x32c   :  { %v2963_v22 = vpop.eup %2962  ;;  %2988 = vpow2.f32 %v2507_v3 }
 0x32d   :  { %v2965_v23 = vpop.eup %2964  ;;  %2990 = vrcp.f32 %v1697_v34  ;;  %v2511_v50 = vmul.f32 -1.442695, %v1508_v19 }
 0x32e   :  { %1859 = vperm.xlu0 %2903, %v2949_v2   ;;  %v2967_v46 = vpop.eup %2966  ;;  %v1699_v48 = vadd.f32 1.0, %v2965_v23  ;;  %2992 = vrcp.f32 %v1691_v32  ;;  %v1437_v28 = vpop.xlane.xlu0 %1436 }
 0x32f   :  { %1854 = vperm.xlu1 %2902, %v2955_v53   ;;  %v2969_v60 = vpop.eup %2968  ;;  %2994 = vpow2.f32 %v2509_v57 }
 0x330   :  { %v2971_v2 = vpop.eup %2970  ;;  %v1692_v14 = vadd.f32 1.0, %v2969_v60  ;;  %2996 = vrcp.f32 %v1699_v48 }
 0x331   :  { %v2973_v39 = vpop.eup %2972 }
 0x332   :  { %1904 = vperm.xlu0 %2903, %v2961_v17   ;;  %v2975_v53 = vpop.eup %2974  ;;  %v1510_v17 = vadd.f32 %v4265_v6, %v1437_v28 }
 0x333   :  { %1864 = vperm.xlu1 %2902, %v2963_v22   ;;  %v2977_v13 = vpop.eup %2976  ;;  %v1701_v44 = vadd.f32 1.0, %v2975_v53 }
 0x334   :  { %v2979_v61 = vpop.eup %2978  ;;  %v1693_v45 = vadd.f32 1.0, %v2977_v13  ;;  %v2513_v34 = vmul.f32 -1.442695, %v1510_v17 }
 0x335   :  { %v2981_v27 = vpop.eup %2980 }
 0x336   :  { %v1439_v31 = vpop.xlane.xlu1 %1438  ;;  %1869 = vperm.xlu0 %2903, %v2967_v46   ;;  %v2983_v22 = vpop.eup %2982  ;;  %v1694_v46 = vadd.f32 1.0, %v2981_v27 }
 0x337   :  { %v1511_v21 = vadd.f32 %v4265_v6, %v1439_v31  ;;  %1899 = vperm.xlu1 %2902, %v2971_v2   ;;  %v2985_v3 = vpop.eup %2984  ;;  %v1496_v31 = vadd.f32 %v4265_v6, %v4305_v0 }
 0x338   :  { %v2987_v23 = vpop.eup %2986 }
 0x339   :  { %v2514_v63 = vmul.f32 -1.442695, %v1511_v21  ;;  %v2989_v54 = vpop.eup %2988  ;;  %v1687_v53 = vadd.f32 1.0, %v2987_v23 }
 0x33a   :  { %1879 = vperm.xlu0 %2903, %v2973_v39   ;;  %v2991_v32 = vpop.eup %2990  ;;  %v1696_v2 = vadd.f32 1.0, %v2989_v54 }
 0x33b   :  { %2998 = vpow2.f32 %v2514_v63  ;;  %1874 = vperm.xlu1 %2902, %v2979_v61   ;;  %v2993_v60 = vpop.eup %2992  ;;  %v2499_v63 = vmul.f32 -1.442695, %v1496_v31 }
 0x33c   :  { %3000 = vrcp.f32 %v1692_v14  ;;  %v2995_v57 = vpop.eup %2994 }
 0x33d   :  { %3002 = vpow2.f32 %v2511_v50  ;;  %v2997_v48 = vpop.eup %2996  ;;  %v1698_v28 = vadd.f32 1.0, %v2995_v57 }
 0x33e   :  { %1929 = vperm.xlu0 %2903, %v2983_v22   ;;  %3004 = vrcp.f32 %v1701_v44  ;;  %v1514_v44 = vadd.f32 %v4265_v6, %v4313_v15 }
 0x33f   :  { %1884 = vperm.xlu1 %2902, %v2985_v3   ;;  %3006 = vrcp.f32 %v1693_v45 }
 0x340   :  { %3008 = vpow2.f32 %v2513_v34  ;;  %v2517_v23 = vmul.f32 -1.442695, %v1514_v44 }
 0x341   :  { %3010 = vrcp.f32 %v1694_v46 }
 0x342   :  { %1939 = vperm.xlu0 %2903, %v2991_v32   ;;  %3012 = vrcp.f32 %v1696_v2 }
 0x343   :  { %1909 = vperm.xlu1 %2902, %v2993_v60  }
 0x345   :  { %v2999_v19 = vpop.eup %2998 }
 0x346   :  { %v3001_v39 = vpop.eup %3000  ;;  %v1703_v21 = vadd.f32 1.0, %v2999_v19  ;;  %1949 = vperm.xlu0 %2903, %v2997_v48  }
 0x347   :  { %1914 = vperm.xlu1 %2902, %v3001_v39   ;;  %v3003_v14 = vpop.eup %3002 }
 0x348   :  { %3014 = vrcp.f32 %v1703_v21  ;;  %v3005_v13 = vpop.eup %3004  ;;  %v1700_v0 = vadd.f32 1.0, %v3003_v14 }
 0x349   :  { %v1441_v61 = vpop.xlane.xlu0 %1440  ;;  %v3007_v50 = vpop.eup %3006  ;;  %3016 = vrcp.f32 %v1687_v53 }
 0x34a   :  { %v1512_v17 = vadd.f32 %v4265_v6, %v1441_v61  ;;  %1959 = vperm.xlu0 %2903, %v3005_v13   ;;  %3018 = vrcp.f32 %v1698_v28  ;;  %v3009_v45 = vpop.eup %3008 }
 0x34b   :  { %1919 = vperm.xlu1 %2902, %v3007_v50   ;;  %3020 = vpow2.f32 %v2499_v63  ;;  %v3011_v3 = vpop.eup %3010  ;;  %v1702_v54 = vadd.f32 1.0, %v3009_v45 }
 0x34c   :  { %v2515_v27 = vmul.f32 -1.442695, %v1512_v17  ;;  %v3013_v15 = vpop.eup %3012 }
 0x34d   :  { %v1449_v22 = vpop.xlane.xlu0 %1448 }
 0x34e   :  { %3022 = vpow2.f32 %v2515_v27  ;;  %v1516_v34 = vadd.f32 %v4265_v6, %v1449_v22 }
 0x34f   :  { %1924 = vperm.xlu1 %2902, %v3011_v3   ;;  %3024 = vrcp.f32 %v1700_v0 }
 0x350   :  { %3026 = vpow2.f32 %v2517_v23  ;;  %v2519_v60 = vmul.f32 -1.442695, %v1516_v34 }
 0x351   :  { %v1453_v46 = vpop.xlane.xlu0 %1452  ;;  %3028 = vrcp.f32 %v1702_v54 }
 0x352   :  { %v3015_v32 = vpop.eup %3014  ;;  %v1518_v57 = vadd.f32 %v4265_v6, %v1453_v46  ;;  %3030 = vpow2.f32 %v2519_v60 }
 0x353   :  { %1969 = vperm.xlu0 %2903, %v3015_v32   ;;  %1934 = vperm.xlu1 %2902, %v3013_v15   ;;  %v3017_v2 = vpop.eup %3016 }
 0x354   :  { %v3019_v19 = vpop.eup %3018  ;;  %v2521_v31 = vmul.f32 -1.442695, %v1518_v57  ;;  %v1451_v57 = vpop.xlane.xlu1 %1450 }
 0x355   :  { %v1457_v48 = vpop.xlane.xlu0 %1456  ;;  %v3021_v21 = vpop.eup %3020 }
 0x356   :  { %v1520_v39 = vadd.f32 %v4265_v6, %v1457_v48  ;;  %3032 = vpow2.f32 %v2521_v31  ;;  %v1688_v63 = vadd.f32 1.0, %v3021_v21 }
 0x357   :  { %1889 = vperm.xlu0 %2903, %v3017_v2   ;;  %1944 = vperm.xlu1 %2902, %v3019_v19  }
 0x358   :  { %v3023_v53 = vpop.eup %3022  ;;  %v2523_v28 = vmul.f32 -1.442695, %v1520_v39  ;;  %v1455_v48 = vpop.xlane.xlu1 %1454 }
 0x359   :  { %v1704_v14 = vadd.f32 1.0, %v3023_v53  ;;  %v3025_v13 = vpop.eup %3024 }
 0x35a   :  { %v3027_v61 = vpop.eup %3026 }
 0x35b   :  { %3034 = vrcp.f32 %v1704_v14  ;;  %1954 = vperm.xlu1 %2902, %v3025_v13   ;;  %v3029_v50 = vpop.eup %3028  ;;  %v1706_v44 = vadd.f32 1.0, %v3027_v61  ;;  %v1517_v61 = vadd.f32 %v4265_v6, %v1451_v57 }
 0x35c   :  { %3036 = vpow2.f32 %v2523_v28  ;;  %v3031_v17 = vpop.eup %3030 }
 0x35d   :  { %3038 = vrcp.f32 %v1688_v63  ;;  %v1708_v0 = vadd.f32 1.0, %v3031_v17  ;;  %v1515_v63 = vadd.f32 %v4265_v6, %v4291_v11 }
 0x35e   :  { %3040 = vrcp.f32 %v1706_v44 }
 0x35f   :  { %1964 = vperm.xlu1 %2902, %v3029_v50   ;;  %3042 = vrcp.f32 %v1708_v0  ;;  %v2518_v17 = vmul.f32 -1.442695, %v1515_v63  ;;  %v2520_v0 = vmul.f32 -1.442695, %v1517_v61 }
 0x360   :  { %v3033_v27 = vpop.eup %3032  ;;  %v1459_v53 = vpop.xlane.xlu1 %1458 }
 0x361   :  { %v1710_v3 = vadd.f32 1.0, %v3033_v27 }
 0x363   :  { %3044 = vrcp.f32 %v1710_v3 }
 0x365   :  { %v3035_v45 = vpop.eup %3034 }
 0x366   :  { %1974 = vperm.xlu1 %2902, %v3035_v45   ;;  %v3037_v22 = vpop.eup %3036 }
 0x367   :  { %v3039_v23 = vpop.eup %3038  ;;  %v1712_v34 = vadd.f32 1.0, %v3037_v22 }
 0x368   :  { %v3041_v46 = vpop.eup %3040 }
 0x369   :  { %3046 = vrcp.f32 %v1712_v34  ;;  %v3043_v60 = vpop.eup %3042  ;;  %v1519_v34 = vadd.f32 %v4265_v6, %v1455_v48 }
 0x36a   :  { %1894 = vperm.xlu1 %2902, %v3039_v23   ;;  %v1461_v54 = vpop.xlane.xlu0 %1460 }
 0x36b   :  { %v1522_v15 = vadd.f32 %v4265_v6, %v1461_v54 }
 0x36d   :  { %v2525_v32 = vmul.f32 -1.442695, %v1522_v15  ;;  %v3045_v2 = vpop.eup %3044 }
 0x36e   :  { %1984 = vperm.xlu1 %2902, %v3041_v46   ;;  %v2522_v46 = vmul.f32 -1.442695, %v1519_v34 }
 0x36f   :  { %3048 = vpow2.f32 %v2525_v32  ;;  %v1521_v32 = vadd.f32 %v4265_v6, %v1459_v53 }
 0x370   :  { %v1463_v13 = vpop.xlane.xlu1 %1462 }
 0x372   :  { %1994 = vperm.xlu1 %2902, %v3043_v60  }
 0x373   :  { %v3047_v19 = vpop.eup %3046 }
 0x376   :  { %2004 = vperm.xlu1 %2902, %v3045_v2   ;;  %v2524_v2 = vmul.f32 -1.442695, %v1521_v32 }
 0x379   :  { %v3049_v31 = vpop.eup %3048 }
 0x37a   :  { %v1714_v39 = vadd.f32 1.0, %v3049_v31  ;;  %2014 = vperm.xlu1 %2902, %v3047_v19   ;;  %v1465_v21 = vpop.xlane.xlu0 %1464  ;;  %v1523_v19 = vadd.f32 %v4265_v6, %v1463_v13 }
 0x37b   :  { %v1524_v14 = vadd.f32 %v4265_v6, %v1465_v21 }
 0x37c   :  { %3050 = vrcp.f32 %v1714_v39 }
 0x37d   :  { %v2527_v28 = vmul.f32 -1.442695, %v1524_v14 }
 0x37f   :  { %3052 = vpow2.f32 %v2527_v28  ;;  %v2526_v28 = vmul.f32 -1.442695, %v1523_v19 }
 0x380   :  { %3054 = vpow2.f32 %v2518_v17 }
 0x381   :  { %3056 = vpow2.f32 %v2520_v0 }
 0x383   :  { %v1467_v50 = vpop.xlane.xlu1 %1466 }
 0x384   :  { %v1525_v63 = vadd.f32 %v4265_v6, %v1467_v50 }
 0x386   :  { %v3051_v44 = vpop.eup %3050  ;;  %v2528_v17 = vmul.f32 -1.442695, %v1525_v63  ;;  %v4574_v63 = vmov 1.0  }
 0x387   :  { %v1443_v27 = vpop.xlane.xlu1 %1442  ;;  %2024 = vperm.xlu1 %2902, %v3051_v44  }
 0x388   :  { %v1513_v45 = vadd.f32 %v4265_v6, %v1443_v27 }
 0x389   :  { %v3053_v22 = vpop.eup %3052 }
 0x38a   :  { %v1716_v3 = vadd.f32 1.0, %v3053_v22  ;;  %v2516_v23 = vmul.f32 -1.442695, %v1513_v45  ;;  %v3055_v60 = vpop.eup %3054 }
 0x38b   :  { %v3057_v57 = vpop.eup %3056  ;;  %v1707_v48 = vadd.f32 1.0, %v3055_v60 }
 0x38c   :  { %3058 = vrcp.f32 %v1716_v3  ;;  %v1709_v61 = vadd.f32 1.0, %v3057_v57 }
 0x38d   :  { %3060 = vpow2.f32 %v2516_v23  ;;  %v1469_v11 = vpop.xlane.xlu0 %1468 }
 0x38e   :  { %v1526_v54 = vadd.f32 %v4265_v6, %v1469_v11  ;;  %v4573_v11 = vlaneseq }
 0x390   :  { %v2529_v15 = vmul.f32 -1.442695, %v1526_v54  ;;  %v4355_v54 = vshrl.u32 %v4573_v11, 7 }
 0x392   :  { %3062 = vpow2.f32 %v2529_v15  ;;  %v2114_v32 = vsub.s32 1, %v4355_v54 }
 0x393   :  { %3064 = vpow2.f32 %v2522_v46 }
 0x394   :  { %3066 = vpow2.f32 %v2524_v2 }
 0x396   :  { %v3059_v31 = vpop.eup %3058 }
 0x397   :  { %v3061_v39 = vpop.eup %3060  ;;  %v1471_v21 = vpop.xlane.xlu1 %1470  ;;  %2034 = vperm.xlu1 %2902, %v3059_v31  }
 0x398   :  { %v1705_v14 = vadd.f32 1.0, %v3061_v39  ;;  %v1527_v13 = vadd.f32 %v4265_v6, %v1471_v21 }
 0x39a   :  { %3068 = vrcp.f32 %v1705_v14  ;;  %v2530_v15 = vmul.f32 -1.442695, %v1527_v13 }
 0x39b   :  { %v1820_v53 = vpop.permute.xlu1 %1819  ;;  %3070 = vrcp.f32 %v1707_v48 }
 0x39c   :  { %v3063_v44 = vpop.eup %3062  ;;  %3072 = vpow2.f32 %v2526_v28  ;;  %v4349_v23 = vmul.f32 %v1820_v53, %v3997_v12  ;;  %v4363_v12 = vld [vmem:[%s4548_s1] sm:$0x7] }
 0x39d   :  { %v1718_v0 = vadd.f32 1.0, %v3063_v44  ;;  %v1473_v27 = vpop.xlane.xlu0 %1472  ;;  %3074 = vrcp.f32 %v1709_v61  ;;  %v3065_v22 = vpop.eup %3064  ;;  %v2115_v19 = vrot.slane %v4363_v12, %v2114_v32 }
 0x39e   :  { %v1528_v45 = vadd.f32 %v4265_v6, %v1473_v27  ;;  %v1711_v46 = vadd.f32 1.0, %v3065_v22  ;;  %v3067_v60 = vpop.eup %3066 }
 0x39f   :  { %3076 = vrcp.f32 %v1718_v0  ;;  %v1825_v3 = vpop.permute.xlu1 %1824  ;;  %v1713_v48 = vadd.f32 1.0, %v3067_v60  ;;  %vm2121_vm0 = vcmp.eq.s32.totalorder %v4355_v54, %v2115_v19 }
 0x3a0   :  { %v2531_v50 = vmul.f32 -1.442695, %v1528_v45  ;;  %v4352_v34 = vmul.f32 %v1825_v3, %v4003_v42  ;;  %3078 = vpow2.f32 %v2528_v17  ;;  %v2110_v42 = vsub.s32 0, %v4355_v54  ;;  %2535 = vmatprep.mubr.msk.f32.mxu1 %vm2121_vm0, %v4574_v63 }
 0x3a2   :  { %3080 = vpow2.f32 %v2531_v50  ;;  %v2711_v6 = vpack.c.bf16 %v4352_v34, %v4349_v23  ;;  %v4368_v39 = vrot.slane %v4363_v12, %v2110_v42 }
 0x3a3   :  { %v1830_v57 = vpop.permute.xlu1 %1829  ;;  %3082 = vpow2.f32 %v2530_v15 }
 0x3a4   :  { %v3069_v2 = vpop.eup %3068  ;;  %3084 = vrcp.f32 %v1711_v46  ;;  %vm2120_vm1 = vcmp.eq.s32.totalorder %v4355_v54, %v4368_v39  ;;  %v4375_v53 = vmul.f32 %v1830_v57, %v4016_v43 }
 0x3a5   :  { %1979 = vperm.xlu0 %2903, %v3069_v2   ;;  %v1840_v31 = vpop.permute.xlu0 %1839  ;;  %v3071_v21 = vpop.eup %3070  ;;  %3086 = vrcp.f32 %v1713_v48 }
 0x3a6   :  { %v3073_v14 = vpop.eup %3072  ;;  %v4383_v50 = vmul.f32 %v1840_v31, %v4033_v56 }
 0x3a7   :  { %v1835_v28 = vpop.permute.xlu1 %1834  ;;  %v3075_v61 = vpop.eup %3074  ;;  %v1715_v13 = vadd.f32 1.0, %v3073_v14 }
 0x3a8   :  { %v4378_v44 = vmul.f32 %v1835_v28, %v4024_v37 }
 0x3a9   :  { %v3077_v17 = vpop.eup %3076  ;;  %1989 = vperm.xlu0 %2903, %v3071_v21   ;;  %v1850_v0 = vpop.permute.xlu0 %1849  ;;  %3088 = vrcp.f32 %v1715_v13 }
 0x3aa   :  { %v2715_v27 = vpack.c.bf16 %v4378_v44, %v4375_v53  ;;  %2044 = vperm.xlu1 %2902, %v3077_v17   ;;  %v3079_v45 = vpop.eup %3078  ;;  %v4391_v42 = vmul.f32 %v1850_v0, %v4045_v7 }
 0x3ab   :  { %v1845_v22 = vpop.permute.xlu1 %1844  ;;  %v1717_v15 = vadd.f32 1.0, %v3079_v45 }
 0x3ac   :  { %v3081_v3 = vpop.eup %3080  ;;  %v4386_v43 = vmul.f32 %v1845_v22, %v4037_v5 }
 0x3ad   :  { %v1720_v37 = vadd.f32 1.0, %v3081_v3  ;;  %1999 = vperm.xlu0 %2903, %v3075_v61   ;;  %v1860_v11 = vpop.permute.xlu0 %1859  ;;  %v3083_v32 = vpop.eup %3082 }
 0x3ae   :  { %v2719_v46 = vpack.c.bf16 %v4386_v43, %v4383_v50  ;;  %v3085_v57 = vpop.eup %3084  ;;  %v1719_v2 = vadd.f32 1.0, %v3083_v32  ;;  %v4399_v48 = vmul.f32 %v1860_v11, %v4059_v52 }
 0x3af   :  { %3090 = vrcp.f32 %v1720_v37  ;;  %v1855_v60 = vpop.permute.xlu1 %1854  ;;  %v3087_v21 = vpop.eup %3086 }
 0x3b0   :  { %v4394_v56 = vmul.f32 %v1855_v60, %v4049_v1  ;;  %3092 = vrcp.f32 %v1717_v15 }
 0x3b1   :  { %2009 = vperm.xlu0 %2903, %v3085_v57   ;;  %v1905_v5 = vpop.permute.xlu0 %1904  ;;  %3094 = vrcp.f32 %v1719_v2 }
 0x3b2   :  { %v2723_v19 = vpack.c.bf16 %v4394_v56, %v4391_v42  ;;  %v2074_v17 = vmul.f32 %v1905_v5, %v4132_v26 }
 0x3b3   :  { %v1865_v31 = vpop.permute.xlu1 %1864  ;;  %v3089_v61 = vpop.eup %3088 }
 0x3b4   :  { %v4402_v14 = vmul.f32 %v1865_v31, %v4063_v62 }
 0x3b5   :  { %2019 = vperm.xlu0 %2903, %v3087_v21   ;;  %v1870_v1 = vpop.permute.xlu0 %1869 }
 0x3b6   :  { %v2727_v7 = vpack.c.bf16 %v4402_v14, %v4399_v48  ;;  %v2067_v62 = vmul.f32 %v1870_v1, %v4068_v55  ;;  %v2118_v55 = vsub.s32 2, %v4355_v54 }
 0x3b7   :  { %v1900_v28 = vpop.permute.xlu1 %1899 }
 0x3b8   :  { %v2073_v0 = vmul.f32 %v1900_v28, %v4123_v9 }
 0x3b9   :  { %v3091_v13 = vpop.eup %3090  ;;  %2029 = vperm.xlu0 %2903, %v3089_v61   ;;  %v1880_v37 = vpop.permute.xlu0 %1879 }
 0x3ba   :  { %v2709_v45 = vpack.c.bf16 %v2074_v17, %v2073_v0  ;;  %2054 = vperm.xlu1 %2902, %v3091_v13   ;;  %v3093_v22 = vpop.eup %3092  ;;  %v2069_v15 = vmul.f32 %v1880_v37, %v4082_v30  ;;  %v3125_v13 = vmov 0.0|0.0   ;;  %v4576_v37 = vld [vmem:[#allocation8_spill] sm:$0xff] }
 0x3bb   :  { %v1875_v52 = vpop.permute.xlu1 %1874  ;;  %v3095_v9 = vpop.eup %3094 }
 0x3bc   :  { %v2068_v3 = vmul.f32 %v1875_v52, %v4072_v18  ;;  %2710 = vmatprep.subr.bf16.mxu1 %v2709_v45  ;;  %v4417_v18 = vrot.slane %v4363_v12, %v2118_v55 }
 0x3bd   :  { %2039 = vperm.xlu0 %2903, %v3093_v22   ;;  %2712 = vmatpush3.bf16.msra.mxu1 %v2711_v6  ;;  %v1930_v30 = vpop.permute.xlu0 %1929 }
 0x3be   :  { %v2731_v26 = vpack.c.bf16 %v2068_v3, %v2067_v62  ;;  %vm2122_vm2 = vcmp.eq.s32.totalorder %v4355_v54, %v4417_v18  ;;  %v2282_v54 = vld [vmem:[%s4552_s5 + $0x30] sm:$0xff] }
 0x3bf   :  { %v1885_v11 = vpop.permute.xlu1 %1884 }
 0x3c0   :  { %v2070_v32 = vmul.f32 %v1885_v11, %v4090_v35  ;;  %v4577_v11 = vld [vmem:[#allocation7_spill] sm:$0xff] }
 0x3c1   :  { %2049 = vperm.xlu0 %2903, %v3095_v9   ;;  %v1940_v2 = vpop.permute.xlu0 %1939 }
 0x3c2   :  { %v2735_v60 = vpack.c.bf16 %v2070_v32, %v2069_v15  ;;  %v4578_v32 = vld [vmem:[#allocation10_spill] sm:$0xff] }
 0x3c3   :  { %v1910_v57 = vpop.permute.xlu1 %1909 }
 0x3c4   :  { %v2075_v23 = vmul.f32 %v1910_v57, %v4144_v8  ;;  %v2079_v8 = vmul.f32 %v1930_v30, %v4180_v41  ;;  %v4579_v57 = vld [vmem:[#allocation9_spill] sm:$0xff] }
 0x3c5   :  { %v1950_v53 = vpop.permute.xlu0 %1949 }
 0x3c6   :  { %v2083_v41 = vmul.f32 %v1950_v53, %v4206_v40  ;;  %v4584_v53 = vld [vmem:[#allocation16_spill] sm:$0xff] }
 0x3c7   :  { %v1915_v42 = vpop.permute.xlu1 %1914 }
 0x3c8   :  { %v2076_v34 = vmul.f32 %v1915_v42, %v4156_v10 }
 0x3c9   :  { %v1960_v1 = vpop.permute.xlu0 %1959 }
 0x3ca   :  { %v2713_v6 = vpack.c.bf16 %v2076_v34, %v2075_v23  ;;  %v4580_v23 = vld [vmem:[#allocation12_spill] sm:$0xff] }
 0x3cb   :  { %v1920_v56 = vpop.permute.xlu1 %1919 }
 0x3cc   :  { %2714 = vmatprep.subr.bf16.mxu1 %v2713_v6  ;;  %v2077_v12 = vmul.f32 %v1920_v56, %v4166_v20  ;;  %v4581_v6 = vld [vmem:[#allocation11_spill] sm:$0xff] }
 0x3cd   :  { %2716 = vmatpush3.bf16.msra.mxu1 %v2715_v27  ;;  %v2081_v27 = vmul.f32 %v1940_v2, %v4196_v33 }
 0x3cf   :  { %v1925_v35 = vpop.permute.xlu1 %1924 }
 0x3d0   :  { %v2078_v5 = vmul.f32 %v1925_v35, %v4173_v49 }
 0x3d2   :  { %v2717_v31 = vpack.c.bf16 %v2078_v5, %v2077_v12  ;;  %v1970_v33 = vpop.permute.xlu0 %1969  ;;  %v4582_v5 = vld [vmem:[#allocation14_spill] sm:$0xff] }
 0x3d3   :  { %v1935_v21 = vpop.permute.xlu1 %1934  ;;  %v2087_v40 = vmul.f32 %v1970_v33, %v4229_v51  ;;  %v4575_v51 = vmov 0.0  }
 0x3d4   :  { %v2080_v10 = vmul.f32 %v1935_v21, %v4188_v29  ;;  %2718 = vmatprep.subr.bf16.mxu1 %v2717_v31  ;;  %v4583_v31 = vld [vmem:[#allocation13_spill] sm:$0xff] }
 0x3d5   :  { %2720 = vmatpush3.bf16.msra.mxu1 %v2719_v46  ;;  %v2085_v46 = vmul.f32 %v1960_v1, %v4219_v25 }
 0x3d6   :  { %v2721_v48 = vpack.c.bf16 %v2080_v10, %v2079_v8  ;;  %v1890_v61 = vpop.permute.xlu0 %1889 }
 0x3d7   :  { %v1945_v44 = vpop.permute.xlu1 %1944  ;;  %v2071_v0 = vmul.f32 %v1890_v61, %v4099_v47 }
 0x3d8   :  { %v2082_v20 = vmul.f32 %v1945_v44, %v4199_v58  ;;  %2722 = vmatprep.subr.bf16.mxu1 %v2721_v48 }
 0x3d9   :  { %2724 = vmatpush3.bf16.msra.mxu1 %v2723_v19 }
 0x3da   :  { %v2725_v49 = vpack.c.bf16 %v2082_v20, %v2081_v27  ;;  %v4585_v27 = vld [vmem:[#allocation15_spill] sm:$0xff] }
 0x3db   :  { %v1955_v14 = vpop.permute.xlu1 %1954 }
 0x3dc   :  { %v2084_v29 = vmul.f32 %v1955_v14, %v4214_v24  ;;  %2726 = vmatprep.subr.bf16.mxu1 %v2725_v49 }
 0x3dd   :  { %2728 = vmatpush3.bf16.msra.mxu1 %v2727_v7 }
 0x3de   :  { %v2729_v50 = vpack.c.bf16 %v2084_v29, %v2083_v41  ;;  %v4586_v29 = vld [vmem:[#allocation18_spill] sm:$0xff] }
 0x3df   :  { %v1965_v43 = vpop.permute.xlu1 %1964 }
 0x3e0   :  { %v2086_v28 = vmul.f32 %v1965_v43, %v4224_v36  ;;  %2730 = vmatprep.subr.bf16.mxu1 %v2729_v50  ;;  %v4587_v50 = vld [vmem:[#allocation17_spill] sm:$0xff] }
 0x3e1   :  { %2732 = vmatpush3.bf16.msra.mxu1 %v2731_v26 }
 0x3e2   :  { %v2733_v58 = vpack.c.bf16 %v2086_v28, %v2085_v46 }
 0x3e4   :  { %2734 = vmatprep.subr.bf16.mxu1 %v2733_v58  ;;  %v4588_v58 = vld [vmem:[#allocation20_spill] sm:$0xff] }
 0x3e5   :  { %v1975_v19 = vpop.permute.xlu1 %1974  ;;  %2736 = vmatpush3.bf16.msra.mxu1 %v2735_v60 }
 0x3e6   :  { %v2088_v24 = vmul.f32 %v1975_v19, %v4236_v16 }
 0x3e8   :  { %v2737_v17 = vpack.c.bf16 %v2088_v24, %v2087_v40  ;;  %v4589_v40 = vld [vmem:[#allocation19_spill] sm:$0xff] }
 0x3e9   :  { %v1895_v7 = vpop.permute.xlu1 %1894 }
 0x3ea   :  { %v2072_v25 = vmul.f32 %v1895_v7, %v4118_v59  ;;  %2738 = vmatprep.subr.bf16.mxu1 %v2737_v17  ;;  %v2276_v17 = vld [vmem:[%s4552_s5] sm:$0xff]  ;;  %v2277_v7 = vld [vmem:[%s4552_s5 + $0x8] sm:$0xff] }
 0x3ec   :  { %v2739_v36 = vpack.c.bf16 %v2072_v25, %v2071_v0  ;;  %v2278_v0 = vld [vmem:[%s4552_s5 + $0x10] sm:$0xff]  ;;  %v2766_v25 = vpack.c.bf16 %v2277_v7, %v2276_v17 }
 0x3ed   :  { %v1985_v16 = vpop.permute.xlu1 %1984 }
 0x3ee   :  { %2740 = vmatpush3.bf16.msra.mxu1 %v2739_v36  ;;  %v2090_v59 = vmul.f32 %v1985_v16, %v4201_v38  ;;  %v2279_v36 = vld [vmem:[%s4552_s5 + $0x18] sm:$0xff] }
 0x3ef   :  { %2741 = vmatprep.subr.bf16.mxu1 %v3125_v13  ;;  %v2769_v16 = vpack.c.bf16 %v2279_v36, %v2278_v0 }
 0x3f1   :  { %2536 = vmatmul.mubr.msk.f32.vlgmr.msra.gmra.mrb[30].mxu1 %vm2120_vm1, %v4574_v63  ;;  %v1995_v45 = vpop.permute.xlu1 %1994 }
 0x3f2   :  { %2639 = vmatprep.mubr.msk.f32.mxu1 %vm3126_vm3, %v4575_v51  ;;  %v2092_v26 = vmul.f32 %v1995_v45, %v4576_v37  ;;  %v2280_v45 = vld [vmem:[%s4552_s5 + $0x20] sm:$0xff] }
 0x3f5   :  { %v2005_v62 = vpop.permute.xlu1 %2004 }
 0x3f6   :  { %v2094_v60 = vmul.f32 %v2005_v62, %v4578_v32  ;;  %v2286_v62 = vld [vmem:[%s4552_s5 + $0x50] sm:$0xff] }
 0x3f9   :  { %v2015_v38 = vpop.permute.xlu1 %2014 }
 0x3fa   :  { %v2096_v34 = vmul.f32 %v2015_v38, %v4580_v23 }
 0x406   :  { %v2025_v56 = vpop.permute.xlu1 %2024 }
 0x407   :  { %v2098_v2 = vmul.f32 %v2025_v56, %v4582_v5 }
 0x416   :  { %v2035_v8 = vpop.permute.xlu1 %2034 }
 0x417   :  { %v2100_v44 = vmul.f32 %v2035_v8, %v4584_v53 }
 0x424   :  { %v1980_v47 = vpop.permute.xlu0 %1979 }
 0x425   :  { %v2089_v52 = vmul.f32 %v1980_v47, %v4244_v4  ;;  %v2281_v47 = vld [vmem:[%s4552_s5 + $0x28] sm:$0xff] }
 0x427   :  { %v2742_v22 = vpack.c.bf16 %v2090_v59, %v2089_v52  ;;  %v2772_v59 = vpack.c.bf16 %v2281_v47, %v2280_v45  ;;  %v2285_v52 = vld [vmem:[%s4552_s5 + $0x48] sm:$0xff] }
 0x428   :  { %v1990_v3 = vpop.permute.xlu0 %1989 }
 0x429   :  { %v2091_v9 = vmul.f32 %v1990_v3, %v4577_v11  ;;  %2743 = vmatpush3.bf16.msra.mxu1 %v2742_v22  ;;  %v2045_v49 = vpop.permute.xlu1 %2044  ;;  %v2287_v3 = vld [vmem:[%s4552_s5 + $0x58] sm:$0xff]  ;;  %v2289_v11 = vld [vmem:[%s4552_s5 + $0x68] sm:$0xff] }
 0x42a   :  { %2744 = vmatprep.subr.bf16.mxu1 %v3125_v13  ;;  %v2102_v1 = vmul.f32 %v2045_v49, %v4586_v29  ;;  %v2781_v37 = vpack.c.bf16 %v2287_v3, %v2286_v62 }
 0x42b   :  { %v2745_v39 = vpack.c.bf16 %v2092_v26, %v2091_v9  ;;  %v2288_v26 = vld [vmem:[%s4552_s5 + $0x60] sm:$0xff] }
 0x42c   :  { %v2000_v15 = vpop.permute.xlu0 %1999  ;;  %v2784_v9 = vpack.c.bf16 %v2289_v11, %v2288_v26 }
 0x42d   :  { %v2093_v55 = vmul.f32 %v2000_v15, %v4579_v57  ;;  %2746 = vmatpush3.bf16.msra.mxu1 %v2745_v39  ;;  %v2290_v39 = vld [vmem:[%s4552_s5 + $0x70] sm:$0xff]  ;;  %v2291_v15 = vld [vmem:[%s4552_s5 + $0x78] sm:$0xff] }
 0x42e   :  { %2747 = vmatprep.subr.bf16.mxu1 %v3125_v13  ;;  %v2787_v32 = vpack.c.bf16 %v2291_v15, %v2290_v39 }
 0x42f   :  { %v2748_v4 = vpack.c.bf16 %v2094_v60, %v2093_v55 }
 0x430   :  { %v2010_v42 = vpop.permute.xlu0 %2009 }
 0x431   :  { %v2095_v30 = vmul.f32 %v2010_v42, %v4581_v6  ;;  %2749 = vmatpush3.bf16.msra.mxu1 %v2748_v4 }
 0x432   :  { %2750 = vmatprep.subr.bf16.mxu1 %v3125_v13 }
 0x433   :  { %v2751_v35 = vpack.c.bf16 %v2096_v34, %v2095_v30 }
 0x434   :  { %v2020_v12 = vpop.permute.xlu0 %2019 }
 0x435   :  { %v2097_v21 = vmul.f32 %v2020_v12, %v4583_v31  ;;  %2752 = vmatpush3.bf16.msra.mxu1 %v2751_v35 }
 0x436   :  { %2753 = vmatprep.subr.bf16.mxu1 %v3125_v13 }
 0x437   :  { %v2754_v10 = vpack.c.bf16 %v2098_v2, %v2097_v21 }
 0x438   :  { %v2030_v48 = vpop.permute.xlu0 %2029 }
 0x439   :  { %v2099_v20 = vmul.f32 %v2030_v48, %v4585_v27  ;;  %2755 = vmatpush3.bf16.msra.mxu1 %v2754_v10  ;;  %v2055_v46 = vpop.permute.xlu1 %2054 }
 0x43a   :  { %2756 = vmatprep.subr.bf16.mxu1 %v3125_v13  ;;  %v2104_v19 = vmul.f32 %v2055_v46, %v4588_v58 }
 0x43b   :  { %v2757_v14 = vpack.c.bf16 %v2100_v44, %v2099_v20 }
 0x43c   :  { %v2040_v41 = vpop.permute.xlu0 %2039 }
 0x43d   :  { %v2101_v43 = vmul.f32 %v2040_v41, %v4587_v50  ;;  %2758 = vmatpush3.bf16.msra.mxu1 %v2757_v14 }
 0x43e   :  { %2759 = vmatprep.subr.bf16.mxu1 %v3125_v13 }
 0x43f   :  { %v2760_v28 = vpack.c.bf16 %v2102_v1, %v2101_v43 }
 0x440   :  { %v2050_v33 = vpop.permute.xlu0 %2049 }
 0x441   :  { %v2103_v24 = vmul.f32 %v2050_v33, %v4589_v40  ;;  %2761 = vmatpush3.bf16.msra.mxu1 %v2760_v28 }
 0x442   :  { %2762 = vmatprep.subr.bf16.mxu1 %v3125_v13 }
 0x443   :  { %v2763_v61 = vpack.c.bf16 %v2104_v19, %v2103_v24 }
 0x445   :  { %2764 = vmatpush3.bf16.msra.mxu1 %v2763_v61 }
 0x446   :  { %2765 = vmatprep.subr.bf16.mxu1 %v3125_v13 }
 0x448   :  { %2640 = vmatmul.mubr.msk.f32.vlgmr.msra.gmra.mrb[32].mxu1 %vm2122_vm2, %v4574_v63  ;;  %v2283_v63 = vld [vmem:[%s4552_s5 + $0x38] sm:$0xff] }
 0x449   :  { %2767 = vmatpush3.bf16.msra.mxu1 %v2766_v25  ;;  %2674 = vmatprep.mubr.msk.f32.mxu1 %vm3126_vm3, %v4575_v51  ;;  %v2775_v18 = vpack.c.bf16 %v2283_v63, %v2282_v54  ;;  %v2284_v51 = vld [vmem:[%s4552_s5 + $0x40] sm:$0xff] }
 0x44a   :  { %2768 = vmatprep.subr.bf16.mxu1 %v3125_v13  ;;  %v2778_v22 = vpack.c.bf16 %v2285_v52, %v2284_v51 }
 0x44d   :  { %2770 = vmatpush3.bf16.msra.mxu1 %v2769_v16 }
 0x44e   :  { %2771 = vmatprep.subr.bf16.mxu1 %v3125_v13 }
 0x451   :  { %2773 = vmatpush3.bf16.msra.mxu1 %v2772_v59 }
 0x452   :  { %2774 = vmatprep.subr.bf16.mxu1 %v3125_v13 }
 0x455   :  { %2776 = vmatpush3.bf16.msra.mxu1 %v2775_v18 }
 0x456   :  { %2777 = vmatprep.subr.bf16.mxu1 %v3125_v13 }
 0x459   :  { %2779 = vmatpush3.bf16.msra.mxu1 %v2778_v22 }
 0x45a   :  { %2780 = vmatprep.subr.bf16.mxu1 %v3125_v13 }
 0x45d   :  { %2782 = vmatpush3.bf16.msra.mxu1 %v2781_v37 }
 0x45e   :  { %2783 = vmatprep.subr.bf16.mxu1 %v3125_v13 }
 0x461   :  { %2785 = vmatpush3.bf16.msra.mxu1 %v2784_v9 }
 0x462   :  { %2786 = vmatprep.subr.bf16.mxu1 %v3125_v13 }
 0x465   :  { %2788 = vmatpush3.bf16.msra.mxu1 %v2787_v32 }
 0x4c4   :  { %v2570_v60 = vpop.f32.mrb[30].mxu1 }
 0x4c5   :  { %v2571_v57 = vpop.f32.mrb[31].mxu1 }
 0x4c6   :  { %v2572_v55 = vadd.f32 %v2571_v57, %v2570_v60 }
 0x51b   :  { %v2266_v38 = vpop.f32.mrb[32].mxu1 }
 0x51c   :  { %v2267_v4 = vadd.f32 %v2572_v55, %v2266_v38  ;;  %v2641_v42 = vpop.f32.mrb[33].mxu1 }
 0x51e   :  { %2675 = vmatmul.mubr.f32.vlgmr.msra.gmra.mrb[34].mxu1 %v2267_v4 }
 0x5f1   :  { %v2358_v13 = vpop.f32.mrb[34].mxu1 }
 0x5f2   :  { %2362 = vst [vmem:[#allocation4] sm:$0xff] %v2358_v13  ;;  %v2676_v23 = vpop.f32.mrb[35].mxu1 }
 0x5f3   :  { %3107 = shalt.err (!%p3104_p4)
}
 0x5f4   :  { %s3108_s13 = scalar_lea.hbm %s4553_s6, 128 }
 0x5f5   :  { %p3109_p5 = scmp.ne.s32.totalorder %s4553_s6, %s3108_s13  ;;  %p3112_p6 = scmp.lt.u32.totalorder %s3108_s13, %s4553_s6 }
 0x5f7   :  { %p3114_p7 = pnand %p3112_p6, %p3109_p5 }
 0x5f9   :  { %3117 = shalt.err (!%p3114_p7)
}
 0x5fa   :  { %2372 = dma.vmem_to_hbm [thread:$0]  %s2370_s10, 128, %s4553_s6, [#allocation5]  }
 0x5fb   :  { %3118 = dma.done.wait [#allocation5], 128  }
 0x5fc   :  { %3119 = vsyncadd [#allocation5], 4294967168 }
 0x5fd   :  { %2376 = vsyncpa [#allocation5], 1 }

</bundles_post_ra>
